<compile_context>
chip_gen: v5e
topology: v5e:2x2
jax: 0.10.0
libtpu: 0.0.40
codegen_flags: <defaults>
</compile_context>

<pallas_src>
import functools

import jax
import jax.numpy as jnp
from jax.experimental import pallas as pl
from jax.experimental.pallas import tpu as pltpu


# ----------------------------------------------------------------------------
# Kernel 1: 3x3 VALID convolution (no bias), taps folded in-kernel.
#   - one grid step per batch image (full-extent NHWC blocks, all "parallel")
#   - optional second input whose channels follow the first (skip-concat fusion)
#   - optional fused BN-apply + ReLU of the producer on the first input
#   - emits per-image BatchNorm partial statistics (sum / sum-of-squares of the
#     f32 accumulator); the bf16 cast happens only at the output store.
# ----------------------------------------------------------------------------
def _conv3x3_kernel(*refs, two_inputs, apply_affine, ho, wo):
    it = iter(refs)
    xa_ref = next(it)
    wa_ref = next(it)
    xb_ref = next(it) if two_inputs else None
    wb_ref = next(it) if two_inputs else None
    scale_ref = next(it) if apply_affine else None
    shift_ref = next(it) if apply_affine else None
    o_ref = next(it)
    sum_ref = next(it)
    sq_ref = next(it)

    def accumulate(x_ref, w_ref, affine, acc):
        ca = x_ref.shape[-1]
        for ky in range(3):
            for kx in range(3):
                a = x_ref[ky:ky + ho, kx:kx + wo, :].reshape(ho * wo, ca)
                if affine:
                    # Deferred BN-apply + ReLU of the producer layer (f32).
                    a = jnp.maximum(
                        a.astype(jnp.float32) * scale_ref[...] + shift_ref[...],
                        0.0)
                p = jnp.dot(a.astype(jnp.bfloat16), w_ref[ky, kx],
                            preferred_element_type=jnp.float32)
                acc = p if acc is None else acc + p
        return acc

    y = accumulate(xa_ref, wa_ref, apply_affine, None)
    if two_inputs:
        y = accumulate(xb_ref, wb_ref, False, y)

    o_ref[...] = y.reshape(ho, wo, -1).astype(o_ref.dtype)
    # Per-image partial stats (reduced over the batch in XLA -> grid stays
    # "parallel"; no cross-step accumulation, no padded-row masking needed).
    sum_ref[...] = jnp.sum(y, axis=0, keepdims=True)
    sq_ref[...] = jnp.sum(y * y, axis=0, keepdims=True)


def conv3x3_bn(xs, w, gamma, beta, scale_in=None, shift_in=None, eps=1e-5):
    """3x3 VALID conv (no bias) of the channel-concat of `xs` (the concat never
    materializes: each input gets its own Cin-slice of the weight).  The
    BN-apply+ReLU of the producer (scale_in/shift_in) is fused into the load of
    xs[0].  Returns the raw (pre-BN) bf16 NHWC output plus this layer's
    training-mode BatchNorm folded (scale, shift)."""
    N, H, W, _ = xs[0].shape
    Ho, Wo = H - 2, W - 2
    Cout = w.shape[0]
    w_t = jnp.transpose(w, (2, 3, 1, 0)).astype(jnp.bfloat16)  # (3,3,Cin,Cout)

    two = len(xs) == 2
    apply_affine = scale_in is not None
    c0 = xs[0].shape[-1]

    args = [xs[0].astype(jnp.bfloat16), w_t[:, :, :c0, :]]
    in_specs = [pl.BlockSpec((None, H, W, c0), lambda n: (n, 0, 0, 0)),
                pl.BlockSpec((3, 3, c0, Cout), lambda n: (0, 0, 0, 0))]
    if two:
        c1 = xs[1].shape[-1]
        args += [xs[1].astype(jnp.bfloat16), w_t[:, :, c0:c0 + c1, :]]
        in_specs += [pl.BlockSpec((None, H, W, c1), lambda n: (n, 0, 0, 0)),
                     pl.BlockSpec((3, 3, c1, Cout), lambda n: (0, 0, 0, 0))]
    if apply_affine:
        args += [scale_in.reshape(1, c0).astype(jnp.float32),
                 shift_in.reshape(1, c0).astype(jnp.float32)]
        in_specs += [pl.BlockSpec((1, c0), lambda n: (0, 0))] * 2

    out_shape = (jax.ShapeDtypeStruct((N, Ho, Wo, Cout), jnp.bfloat16),
                 jax.ShapeDtypeStruct((N, 1, Cout), jnp.float32),
                 jax.ShapeDtypeStruct((N, 1, Cout), jnp.float32))
    out_specs = (pl.BlockSpec((None, Ho, Wo, Cout), lambda n: (n, 0, 0, 0)),
                 pl.BlockSpec((None, 1, Cout), lambda n: (n, 0, 0)),
                 pl.BlockSpec((None, 1, Cout), lambda n: (n, 0, 0)))

    kernel = functools.partial(_conv3x3_kernel, two_inputs=two,
                               apply_affine=apply_affine, ho=Ho, wo=Wo)
    # TODO(synk): for production-scale spatial sizes, tile H into row blocks with
    # a +2-row halo (and re-derive the VMEM budget for v7x's 64 MiB) instead of
    # full-image blocks.
    y, s, sq = pl.pallas_call(
        kernel,
        out_shape=out_shape,
        grid_spec=pltpu.PrefetchScalarGridSpec(
            num_scalar_prefetch=0, grid=(N,),
            in_specs=in_specs, out_specs=out_specs),
        compiler_params=pltpu.CompilerParams(
            dimension_semantics=("parallel",)),
    )(*args)

    # Fold training-mode BatchNorm (batch stats, biased var) into (scale, shift).
    count = float(N * Ho * Wo)
    mean = jnp.sum(s, axis=(0, 1)) / count
    var = jnp.sum(sq, axis=(0, 1)) / count - mean * mean
    scale = gamma / jnp.sqrt(var + eps)
    shift = beta - mean * scale
    return y, scale, shift


# ----------------------------------------------------------------------------
# Kernel 2: per-pixel matmul (ConvTranspose2d(k=2,s=2) and the final 1x1 conv)
#   o = [relu(x*scale+shift)] @ W + bias, per-image grid, bf16/f32 store.
# ----------------------------------------------------------------------------
def _pointwise_kernel(*refs, apply_affine):
    it = iter(refs)
    x_ref = next(it)
    w_ref = next(it)
    scale_ref = next(it) if apply_affine else None
    shift_ref = next(it) if apply_affine else None
    bias_ref = next(it)
    o_ref = next(it)

    h, w, cin = x_ref.shape
    a = x_ref[...].reshape(h * w, cin)
    if apply_affine:
        a = jnp.maximum(a.astype(jnp.float32) * scale_ref[...] + shift_ref[...],
                        0.0)
    y = jnp.dot(a.astype(jnp.bfloat16), w_ref[...],
                preferred_element_type=jnp.float32) + bias_ref[...]
    o_ref[...] = y.reshape(h, w, -1).astype(o_ref.dtype)


def pointwise_matmul(x_nhwc, w_mat, bias, *, scale=None, shift=None,
                     out_dtype=jnp.bfloat16):
    N, H, W, Cin = x_nhwc.shape
    Kout = w_mat.shape[1]
    apply_affine = scale is not None

    args = [x_nhwc.astype(jnp.bfloat16), w_mat.astype(jnp.bfloat16)]
    in_specs = [pl.BlockSpec((None, H, W, Cin), lambda n: (n, 0, 0, 0)),
                pl.BlockSpec((Cin, Kout), lambda n: (0, 0))]
    if apply_affine:
        args += [scale.reshape(1, Cin).astype(jnp.float32),
                 shift.reshape(1, Cin).astype(jnp.float32)]
        in_specs += [pl.BlockSpec((1, Cin), lambda n: (0, 0))] * 2
    args.append(bias.reshape(1, Kout).astype(jnp.float32))
    in_specs.append(pl.BlockSpec((1, Kout), lambda n: (0, 0)))

    return pl.pallas_call(
        functools.partial(_pointwise_kernel, apply_affine=apply_affine),
        out_shape=jax.ShapeDtypeStruct((N, H, W, Kout), out_dtype),
        grid_spec=pltpu.PrefetchScalarGridSpec(
            num_scalar_prefetch=0, grid=(N,),
            in_specs=in_specs,
            out_specs=pl.BlockSpec((None, H, W, Kout), lambda n: (n, 0, 0, 0))),
        compiler_params=pltpu.CompilerParams(
            dimension_semantics=("parallel",)),
    )(*args)


# ----------------------------------------------------------------------------
# Decoder forward (NHWC end-to-end; single NCHW<->NHWC transpose per boundary)
# ----------------------------------------------------------------------------
def decoder_forward(x, skips, params):
    # TODO(synk): the reference nn.Sequential of two-argument Upsample modules is
    # not runnable as written; we thread U-Net skip tensors explicitly instead.
    cur = jnp.transpose(x, (0, 2, 3, 1)).astype(jnp.bfloat16)
    # Hoist all skip NCHW->NHWC transposes (+ bf16 casts) out of the stage loop.
    skips_nhwc = [jnp.transpose(s, (0, 2, 3, 1)).astype(jnp.bfloat16)
                  for s in skips]

    scale = shift = None          # pending BN-apply+ReLU of the producer layer
    for p, skip in zip(params["ups"], skips_nhwc):
        N, H, W, Cin = cur.shape
        Cup = p["up_w"].shape[1]
        # ConvTranspose2d(k=2,s=2): columns ordered (dy, dx, co) so co stays on
        # the lane axis and the unshuffle below is a contiguous-block reshape.
        w_up = jnp.transpose(p["up_w"], (0, 2, 3, 1)).reshape(Cin, 4 * Cup)
        y4 = pointwise_matmul(cur, w_up, jnp.tile(p["up_b"], 4),
                              scale=scale, shift=shift,
                              out_dtype=jnp.bfloat16)
        x1 = jnp.transpose(y4.reshape(N, H, W, 2, 2, Cup),
                           (0, 1, 3, 2, 4, 5)).reshape(N, 2 * H, 2 * W, Cup)
        dY = skip.shape[1] - x1.shape[1]
        dX = skip.shape[2] - x1.shape[2]
        if dY or dX:
            x1 = jnp.pad(x1, ((0, 0), (dY // 2, dY - dY // 2),
                              (dX // 2, dX - dX // 2), (0, 0)))
        c = p["conv"]
        # DoubleConv: conv1 reads [skip, x1] (concat fused into the kernel),
        # conv2 fuses BN1+ReLU into its load; BN2 apply is deferred downstream.
        y1, sc1, sh1 = conv3x3_bn([skip, x1], c["w1"], c["g1"], c["b1"])
        cur, scale, shift = conv3x3_bn([y1], c["w2"], c["g2"], c["b2"],
                                       scale_in=sc1, shift_in=sh1)

    wf, bf = params["final_w"], params["final_b"]
    wmat = wf.reshape(wf.shape[0], wf.shape[1]).T      # (C, Cf)
    y = pointwise_matmul(cur, wmat, bf, scale=scale, shift=shift,
                         out_dtype=jnp.float32)
    return jnp.transpose(y, (0, 3, 1, 2))


# ----------------------------------------------------------------------------
# Deterministic parameter init
# ----------------------------------------------------------------------------
def init_decoder_params(key, layers):
    keys = iter(jax.random.split(key, 32))

    def nrm(shape, scale=0.1):
        return scale * jax.random.normal(next(keys), shape, jnp.float32)

    ups = []
    for i in range(4):
        inp, out = layers[i], layers[i + 1]
        ups.append(dict(
            up_w=nrm((inp, inp // 2, 2, 2)),
            up_b=nrm((inp // 2,)),
            conv=dict(
                w1=nrm((out, inp, 3, 3)),
                g1=jnp.ones((out,), jnp.float32),
                b1=jnp.zeros((out,), jnp.float32),
                w2=nrm((out, out, 3, 3)),
                g2=jnp.ones((out,), jnp.float32),
                b2=jnp.zeros((out,), jnp.float32),
            ),
        ))
    return dict(
        ups=ups,
        final_w=nrm((layers[5], layers[4], 1, 1)),
        final_b=nrm((layers[5],)),
    )


# ----------------------------------------------------------------------------
# Pure-JAX reference (mirrors the bf16-input / f32-accumulate precision policy,
# but uses independent conv primitives / NCHW layout)
# ----------------------------------------------------------------------------
def _ref_affine_relu(y, scale, shift):
    yb = y.astype(jnp.bfloat16).astype(jnp.float32)
    return jnp.maximum(yb * scale[None, :, None, None]
                       + shift[None, :, None, None], 0.0)


def _ref_bn(y, gamma, beta, eps=1e-5):
    mean = y.mean(axis=(0, 2, 3))
    var = (y * y).mean(axis=(0, 2, 3)) - mean * mean
    scale = gamma / jnp.sqrt(var + eps)
    shift = beta - mean * scale
    return scale, shift


def _ref_conv3x3(x, w):
    return jax.lax.conv_general_dilated(
        x.astype(jnp.bfloat16), w.astype(jnp.bfloat16), (1, 1), "VALID",
        dimension_numbers=("NCHW", "OIHW", "NCHW"),
        preferred_element_type=jnp.float32)


def _ref_conv_transpose(x, w, bias):
    N, Cin, H, W = x.shape
    Cout = w.shape[1]
    t = jnp.einsum("nihw,iodk->nohdwk", x.astype(jnp.bfloat16),
                   w.astype(jnp.bfloat16), preferred_element_type=jnp.float32)
    return t.reshape(N, Cout, 2 * H, 2 * W) + bias[None, :, None, None]


def ref_decoder(x, skips, params):
    pend = None
    for p, skip in zip(params["ups"], skips):
        xin = _ref_affine_relu(x, *pend) if pend is not None else x
        x1 = _ref_conv_transpose(xin, p["up_w"], p["up_b"])
        dY = skip.shape[2] - x1.shape[2]
        dX = skip.shape[3] - x1.shape[3]
        x1 = jnp.pad(x1, ((0, 0), (0, 0), (dY // 2, dY - dY // 2),
                          (dX // 2, dX - dX // 2)))
        xc = jnp.concatenate([skip, x1], axis=1)
        c = p["conv"]
        y1 = _ref_conv3x3(xc, c["w1"])
        s1, sh1 = _ref_bn(y1, c["g1"], c["b1"])
        y2 = _ref_conv3x3(_ref_affine_relu(y1, s1, sh1), c["w2"])
        s2, sh2 = _ref_bn(y2, c["g2"], c["b2"])
        x, pend = y2, (s2, sh2)
    xin = _ref_affine_relu(x, *pend)
    wf = params["final_w"][:, :, 0, 0]
    out = jnp.einsum("nchw,fc->nfhw", xin.astype(jnp.bfloat16),
                     wf.astype(jnp.bfloat16), preferred_element_type=jnp.float32)
    return out + params["final_b"][None, :, None, None]


# ----------------------------------------------------------------------------
if __name__ == "__main__":
    layers = [16, 8, 8, 8, 8, 2]
    key = jax.random.PRNGKey(0)
    k_par, k_x, k_sk, k_ta, k_tb, k_tw = jax.random.split(key, 6)

    # ---- unit check: tap-folded two-input conv3x3 kernel vs lax.conv ---------
    xa = jax.random.normal(k_ta, (2, 10, 10, 8), jnp.float32)
    xb = jax.random.normal(k_tb, (2, 10, 10, 8), jnp.float32)
    wt = 0.1 * jax.random.normal(k_tw, (8, 16, 3, 3), jnp.float32)
    yk, _, _ = conv3x3_bn([xa, xb], wt, jnp.ones((8,), jnp.float32),
                          jnp.zeros((8,), jnp.float32))
    xcat = jnp.concatenate([xa, xb], axis=-1)
    yref = jax.lax.conv_general_dilated(
        jnp.transpose(xcat, (0, 3, 1, 2)).astype(jnp.bfloat16),
        wt.astype(jnp.bfloat16), (1, 1), "VALID",
        dimension_numbers=("NCHW", "OIHW", "NCHW"),
        preferred_element_type=jnp.float32)
    yref = jnp.transpose(yref, (0, 2, 3, 1))
    assert bool(jnp.allclose(yk.astype(jnp.float32), yref,
                             atol=5e-2, rtol=5e-2)), float(
        jnp.max(jnp.abs(yk.astype(jnp.float32) - yref)))

    # ---- build decoder inputs ------------------------------------------------
    params = init_decoder_params(k_par, layers)
    N, H0 = 2, 6
    x = jax.random.normal(k_x, (N, layers[0], H0, H0), jnp.float32)

    skips = []
    sk_keys = jax.random.split(k_sk, 4)
    h = H0
    for i in range(4):
        inp = layers[i]
        h_up = 2 * h
        skips.append(jax.random.normal(
            sk_keys[i], (N, inp - inp // 2, h_up, h_up), jnp.float32))
        h = h_up - 4  # two VALID 3x3 convs

    # ---- run the decoder & check against the reference -----------------------
    fwd = jax.jit(decoder_forward)
    out = jax.block_until_ready(fwd(x, tuple(skips), params))
    ref = ref_decoder(x, skips, params)

    assert out.shape == (N, layers[5], h, h), out.shape
    assert out.dtype == jnp.float32
    assert bool(jnp.isfinite(out).all())
    assert bool(jnp.allclose(out, ref, atol=2e-2, rtol=2e-2)), float(
        jnp.max(jnp.abs(out - ref)))
    print("KERNEL_OK")
</pallas_src>

<mosaic_0001>
module attributes {stable_mosaic.version = 11 : i64} {
  func.func @_conv3x3_kernel(%arg0: i32, %arg1: memref<1x10x10x8xbf16, #tpu.memory_space<vmem>>, %arg2: memref<3x3x8x8xbf16, #tpu.memory_space<vmem>>, %arg3: memref<1x10x10x8xbf16, #tpu.memory_space<vmem>>, %arg4: memref<3x3x8x8xbf16, #tpu.memory_space<vmem>>, %arg5: memref<1x8x8x8xbf16, #tpu.memory_space<vmem>>, %arg6: memref<1x1x8xf32, #tpu.memory_space<vmem>>, %arg7: memref<1x1x8xf32, #tpu.memory_space<vmem>>) attributes {dimension_semantics = [#tpu.dimension_semantics<parallel>], iteration_bounds = array<i64: 2>, scalar_prefetch = 0 : i64, scratch_operands = 0 : i64, tpu.core_type = #tpu.core_type<tc>, window_params = [{transform_indices = @transform_0, window_bounds = array<i64: 1, 10, 10, 8>}, {pipeline_mode = #tpu.pipeline_mode<synchronous>, transform_indices = @transform_1, window_bounds = array<i64: 3, 3, 8, 8>}, {transform_indices = @transform_2, window_bounds = array<i64: 1, 10, 10, 8>}, {pipeline_mode = #tpu.pipeline_mode<synchronous>, transform_indices = @transform_3, window_bounds = array<i64: 3, 3, 8, 8>}, {transform_indices = @transform_4, window_bounds = array<i64: 1, 8, 8, 8>}, {transform_indices = @transform_5, window_bounds = array<i64: 1, 1, 8>}, {transform_indices = @transform_6, window_bounds = array<i64: 1, 1, 8>}]} {
    %c0 = arith.constant 0 : index
    %c0_0 = arith.constant 0 : index
    %c0_1 = arith.constant 0 : index
    %c0_2 = arith.constant 0 : index
    %0 = vector.load %arg1[%c0, %c0_0, %c0_1, %c0_2] : memref<1x10x10x8xbf16, #tpu.memory_space<vmem>>, vector<1x8x8x8xbf16>
    %1 = vector.shape_cast %0 : vector<1x8x8x8xbf16> to vector<8x8x8xbf16>
    %2 = vector.shape_cast %1 : vector<8x8x8xbf16> to vector<64x8xbf16>
    %c0_3 = arith.constant 0 : index
    %c0_4 = arith.constant 0 : index
    %c0_5 = arith.constant 0 : index
    %c0_6 = arith.constant 0 : index
    %3 = vector.load %arg2[%c0_3, %c0_4, %c0_5, %c0_6] : memref<3x3x8x8xbf16, #tpu.memory_space<vmem>>, vector<1x1x8x8xbf16>
    %4 = vector.shape_cast %3 : vector<1x1x8x8xbf16> to vector<8x8xbf16>
    %cst = arith.constant dense<0.000000e+00> : vector<64x8xf32>
    %5 = tpu.matmul %2, %4, %cst {dimension_numbers = #tpu.dot_dimension_numbers<[1], [0], [0], [1], [0, 0, 1, 1], [], []>} : vector<64x8xbf16>, vector<8x8xbf16>, vector<64x8xf32> -> vector<64x8xf32>
    %c0_7 = arith.constant 0 : index
    %c0_8 = arith.constant 0 : index
    %c1 = arith.constant 1 : index
    %c0_9 = arith.constant 0 : index
    %6 = vector.load %arg1[%c0_7, %c0_8, %c1, %c0_9] : memref<1x10x10x8xbf16, #tpu.memory_space<vmem>>, vector<1x8x8x8xbf16>
    %7 = vector.shape_cast %6 : vector<1x8x8x8xbf16> to vector<8x8x8xbf16>
    %8 = vector.shape_cast %7 : vector<8x8x8xbf16> to vector<64x8xbf16>
    %c0_10 = arith.constant 0 : index
    %c1_11 = arith.constant 1 : index
    %c0_12 = arith.constant 0 : index
    %c0_13 = arith.constant 0 : index
    %9 = vector.load %arg2[%c0_10, %c1_11, %c0_12, %c0_13] : memref<3x3x8x8xbf16, #tpu.memory_space<vmem>>, vector<1x1x8x8xbf16>
    %10 = vector.shape_cast %9 : vector<1x1x8x8xbf16> to vector<8x8xbf16>
    %cst_14 = arith.constant dense<0.000000e+00> : vector<64x8xf32>
    %11 = tpu.matmul %8, %10, %cst_14 {dimension_numbers = #tpu.dot_dimension_numbers<[1], [0], [0], [1], [0, 0, 1, 1], [], []>} : vector<64x8xbf16>, vector<8x8xbf16>, vector<64x8xf32> -> vector<64x8xf32>
    %12 = arith.addf %5, %11 : vector<64x8xf32>
    %c0_15 = arith.constant 0 : index
    %c0_16 = arith.constant 0 : index
    %c2 = arith.constant 2 : index
    %c0_17 = arith.constant 0 : index
    %13 = vector.load %arg1[%c0_15, %c0_16, %c2, %c0_17] : memref<1x10x10x8xbf16, #tpu.memory_space<vmem>>, vector<1x8x8x8xbf16>
    %14 = vector.shape_cast %13 : vector<1x8x8x8xbf16> to vector<8x8x8xbf16>
    %15 = vector.shape_cast %14 : vector<8x8x8xbf16> to vector<64x8xbf16>
    %c0_18 = arith.constant 0 : index
    %c2_19 = arith.constant 2 : index
    %c0_20 = arith.constant 0 : index
    %c0_21 = arith.constant 0 : index
    %16 = vector.load %arg2[%c0_18, %c2_19, %c0_20, %c0_21] : memref<3x3x8x8xbf16, #tpu.memory_space<vmem>>, vector<1x1x8x8xbf16>
    %17 = vector.shape_cast %16 : vector<1x1x8x8xbf16> to vector<8x8xbf16>
    %cst_22 = arith.constant dense<0.000000e+00> : vector<64x8xf32>
    %18 = tpu.matmul %15, %17, %cst_22 {dimension_numbers = #tpu.dot_dimension_numbers<[1], [0], [0], [1], [0, 0, 1, 1], [], []>} : vector<64x8xbf16>, vector<8x8xbf16>, vector<64x8xf32> -> vector<64x8xf32>
    %19 = arith.addf %12, %18 : vector<64x8xf32>
    %c0_23 = arith.constant 0 : index
    %c1_24 = arith.constant 1 : index
    %c0_25 = arith.constant 0 : index
    %c0_26 = arith.constant 0 : index
    %20 = vector.load %arg1[%c0_23, %c1_24, %c0_25, %c0_26] : memref<1x10x10x8xbf16, #tpu.memory_space<vmem>>, vector<1x8x8x8xbf16>
    %21 = vector.shape_cast %20 : vector<1x8x8x8xbf16> to vector<8x8x8xbf16>
    %22 = vector.shape_cast %21 : vector<8x8x8xbf16> to vector<64x8xbf16>
    %c1_27 = arith.constant 1 : index
    %c0_28 = arith.constant 0 : index
    %c0_29 = arith.constant 0 : index
    %c0_30 = arith.constant 0 : index
    %23 = vector.load %arg2[%c1_27, %c0_28, %c0_29, %c0_30] : memref<3x3x8x8xbf16, #tpu.memory_space<vmem>>, vector<1x1x8x8xbf16>
    %24 = vector.shape_cast %23 : vector<1x1x8x8xbf16> to vector<8x8xbf16>
    %cst_31 = arith.constant dense<0.000000e+00> : vector<64x8xf32>
    %25 = tpu.matmul %22, %24, %cst_31 {dimension_numbers = #tpu.dot_dimension_numbers<[1], [0], [0], [1], [0, 0, 1, 1], [], []>} : vector<64x8xbf16>, vector<8x8xbf16>, vector<64x8xf32> -> vector<64x8xf32>
    %26 = arith.addf %19, %25 : vector<64x8xf32>
    %c0_32 = arith.constant 0 : index
    %c1_33 = arith.constant 1 : index
    %c1_34 = arith.constant 1 : index
    %c0_35 = arith.constant 0 : index
    %27 = vector.load %arg1[%c0_32, %c1_33, %c1_34, %c0_35] : memref<1x10x10x8xbf16, #tpu.memory_space<vmem>>, vector<1x8x8x8xbf16>
    %28 = vector.shape_cast %27 : vector<1x8x8x8xbf16> to vector<8x8x8xbf16>
    %29 = vector.shape_cast %28 : vector<8x8x8xbf16> to vector<64x8xbf16>
    %c1_36 = arith.constant 1 : index
    %c1_37 = arith.constant 1 : index
    %c0_38 = arith.constant 0 : index
    %c0_39 = arith.constant 0 : index
    %30 = vector.load %arg2[%c1_36, %c1_37, %c0_38, %c0_39] : memref<3x3x8x8xbf16, #tpu.memory_space<vmem>>, vector<1x1x8x8xbf16>
    %31 = vector.shape_cast %30 : vector<1x1x8x8xbf16> to vector<8x8xbf16>
    %cst_40 = arith.constant dense<0.000000e+00> : vector<64x8xf32>
    %32 = tpu.matmul %29, %31, %cst_40 {dimension_numbers = #tpu.dot_dimension_numbers<[1], [0], [0], [1], [0, 0, 1, 1], [], []>} : vector<64x8xbf16>, vector<8x8xbf16>, vector<64x8xf32> -> vector<64x8xf32>
    %33 = arith.addf %26, %32 : vector<64x8xf32>
    %c0_41 = arith.constant 0 : index
    %c1_42 = arith.constant 1 : index
    %c2_43 = arith.constant 2 : index
    %c0_44 = arith.constant 0 : index
    %34 = vector.load %arg1[%c0_41, %c1_42, %c2_43, %c0_44] : memref<1x10x10x8xbf16, #tpu.memory_space<vmem>>, vector<1x8x8x8xbf16>
    %35 = vector.shape_cast %34 : vector<1x8x8x8xbf16> to vector<8x8x8xbf16>
    %36 = vector.shape_cast %35 : vector<8x8x8xbf16> to vector<64x8xbf16>
    %c1_45 = arith.constant 1 : index
    %c2_46 = arith.constant 2 : index
    %c0_47 = arith.constant 0 : index
    %c0_48 = arith.constant 0 : index
    %37 = vector.load %arg2[%c1_45, %c2_46, %c0_47, %c0_48] : memref<3x3x8x8xbf16, #tpu.memory_space<vmem>>, vector<1x1x8x8xbf16>
    %38 = vector.shape_cast %37 : vector<1x1x8x8xbf16> to vector<8x8xbf16>
    %cst_49 = arith.constant dense<0.000000e+00> : vector<64x8xf32>
    %39 = tpu.matmul %36, %38, %cst_49 {dimension_numbers = #tpu.dot_dimension_numbers<[1], [0], [0], [1], [0, 0, 1, 1], [], []>} : vector<64x8xbf16>, vector<8x8xbf16>, vector<64x8xf32> -> vector<64x8xf32>
    %40 = arith.addf %33, %39 : vector<64x8xf32>
    %c0_50 = arith.constant 0 : index
    %c2_51 = arith.constant 2 : index
    %c0_52 = arith.constant 0 : index
    %c0_53 = arith.constant 0 : index
    %41 = vector.load %arg1[%c0_50, %c2_51, %c0_52, %c0_53] : memref<1x10x10x8xbf16, #tpu.memory_space<vmem>>, vector<1x8x8x8xbf16>
    %42 = vector.shape_cast %41 : vector<1x8x8x8xbf16> to vector<8x8x8xbf16>
    %43 = vector.shape_cast %42 : vector<8x8x8xbf16> to vector<64x8xbf16>
    %c2_54 = arith.constant 2 : index
    %c0_55 = arith.constant 0 : index
    %c0_56 = arith.constant 0 : index
    %c0_57 = arith.constant 0 : index
    %44 = vector.load %arg2[%c2_54, %c0_55, %c0_56, %c0_57] : memref<3x3x8x8xbf16, #tpu.memory_space<vmem>>, vector<1x1x8x8xbf16>
    %45 = vector.shape_cast %44 : vector<1x1x8x8xbf16> to vector<8x8xbf16>
    %cst_58 = arith.constant dense<0.000000e+00> : vector<64x8xf32>
    %46 = tpu.matmul %43, %45, %cst_58 {dimension_numbers = #tpu.dot_dimension_numbers<[1], [0], [0], [1], [0, 0, 1, 1], [], []>} : vector<64x8xbf16>, vector<8x8xbf16>, vector<64x8xf32> -> vector<64x8xf32>
    %47 = arith.addf %40, %46 : vector<64x8xf32>
    %c0_59 = arith.constant 0 : index
    %c2_60 = arith.constant 2 : index
    %c1_61 = arith.constant 1 : index
    %c0_62 = arith.constant 0 : index
    %48 = vector.load %arg1[%c0_59, %c2_60, %c1_61, %c0_62] : memref<1x10x10x8xbf16, #tpu.memory_space<vmem>>, vector<1x8x8x8xbf16>
    %49 = vector.shape_cast %48 : vector<1x8x8x8xbf16> to vector<8x8x8xbf16>
    %50 = vector.shape_cast %49 : vector<8x8x8xbf16> to vector<64x8xbf16>
    %c2_63 = arith.constant 2 : index
    %c1_64 = arith.constant 1 : index
    %c0_65 = arith.constant 0 : index
    %c0_66 = arith.constant 0 : index
    %51 = vector.load %arg2[%c2_63, %c1_64, %c0_65, %c0_66] : memref<3x3x8x8xbf16, #tpu.memory_space<vmem>>, vector<1x1x8x8xbf16>
    %52 = vector.shape_cast %51 : vector<1x1x8x8xbf16> to vector<8x8xbf16>
    %cst_67 = arith.constant dense<0.000000e+00> : vector<64x8xf32>
    %53 = tpu.matmul %50, %52, %cst_67 {dimension_numbers = #tpu.dot_dimension_numbers<[1], [0], [0], [1], [0, 0, 1, 1], [], []>} : vector<64x8xbf16>, vector<8x8xbf16>, vector<64x8xf32> -> vector<64x8xf32>
    %54 = arith.addf %47, %53 : vector<64x8xf32>
    %c0_68 = arith.constant 0 : index
    %c2_69 = arith.constant 2 : index
    %c2_70 = arith.constant 2 : index
    %c0_71 = arith.constant 0 : index
    %55 = vector.load %arg1[%c0_68, %c2_69, %c2_70, %c0_71] : memref<1x10x10x8xbf16, #tpu.memory_space<vmem>>, vector<1x8x8x8xbf16>
    %56 = vector.shape_cast %55 : vector<1x8x8x8xbf16> to vector<8x8x8xbf16>
    %57 = vector.shape_cast %56 : vector<8x8x8xbf16> to vector<64x8xbf16>
    %c2_72 = arith.constant 2 : index
    %c2_73 = arith.constant 2 : index
    %c0_74 = arith.constant 0 : index
    %c0_75 = arith.constant 0 : index
    %58 = vector.load %arg2[%c2_72, %c2_73, %c0_74, %c0_75] : memref<3x3x8x8xbf16, #tpu.memory_space<vmem>>, vector<1x1x8x8xbf16>
    %59 = vector.shape_cast %58 : vector<1x1x8x8xbf16> to vector<8x8xbf16>
    %cst_76 = arith.constant dense<0.000000e+00> : vector<64x8xf32>
    %60 = tpu.matmul %57, %59, %cst_76 {dimension_numbers = #tpu.dot_dimension_numbers<[1], [0], [0], [1], [0, 0, 1, 1], [], []>} : vector<64x8xbf16>, vector<8x8xbf16>, vector<64x8xf32> -> vector<64x8xf32>
    %61 = arith.addf %54, %60 : vector<64x8xf32>
    %c0_77 = arith.constant 0 : index
    %c0_78 = arith.constant 0 : index
    %c0_79 = arith.constant 0 : index
    %c0_80 = arith.constant 0 : index
    %62 = vector.load %arg3[%c0_77, %c0_78, %c0_79, %c0_80] : memref<1x10x10x8xbf16, #tpu.memory_space<vmem>>, vector<1x8x8x8xbf16>
    %63 = vector.shape_cast %62 : vector<1x8x8x8xbf16> to vector<8x8x8xbf16>
    %64 = vector.shape_cast %63 : vector<8x8x8xbf16> to vector<64x8xbf16>
    %c0_81 = arith.constant 0 : index
    %c0_82 = arith.constant 0 : index
    %c0_83 = arith.constant 0 : index
    %c0_84 = arith.constant 0 : index
    %65 = vector.load %arg4[%c0_81, %c0_82, %c0_83, %c0_84] : memref<3x3x8x8xbf16, #tpu.memory_space<vmem>>, vector<1x1x8x8xbf16>
    %66 = vector.shape_cast %65 : vector<1x1x8x8xbf16> to vector<8x8xbf16>
    %cst_85 = arith.constant dense<0.000000e+00> : vector<64x8xf32>
    %67 = tpu.matmul %64, %66, %cst_85 {dimension_numbers = #tpu.dot_dimension_numbers<[1], [0], [0], [1], [0, 0, 1, 1], [], []>} : vector<64x8xbf16>, vector<8x8xbf16>, vector<64x8xf32> -> vector<64x8xf32>
    %68 = arith.addf %61, %67 : vector<64x8xf32>
    %c0_86 = arith.constant 0 : index
    %c0_87 = arith.constant 0 : index
    %c1_88 = arith.constant 1 : index
    %c0_89 = arith.constant 0 : index
    %69 = vector.load %arg3[%c0_86, %c0_87, %c1_88, %c0_89] : memref<1x10x10x8xbf16, #tpu.memory_space<vmem>>, vector<1x8x8x8xbf16>
    %70 = vector.shape_cast %69 : vector<1x8x8x8xbf16> to vector<8x8x8xbf16>
    %71 = vector.shape_cast %70 : vector<8x8x8xbf16> to vector<64x8xbf16>
    %c0_90 = arith.constant 0 : index
    %c1_91 = arith.constant 1 : index
    %c0_92 = arith.constant 0 : index
    %c0_93 = arith.constant 0 : index
    %72 = vector.load %arg4[%c0_90, %c1_91, %c0_92, %c0_93] : memref<3x3x8x8xbf16, #tpu.memory_space<vmem>>, vector<1x1x8x8xbf16>
    %73 = vector.shape_cast %72 : vector<1x1x8x8xbf16> to vector<8x8xbf16>
    %cst_94 = arith.constant dense<0.000000e+00> : vector<64x8xf32>
    %74 = tpu.matmul %71, %73, %cst_94 {dimension_numbers = #tpu.dot_dimension_numbers<[1], [0], [0], [1], [0, 0, 1, 1], [], []>} : vector<64x8xbf16>, vector<8x8xbf16>, vector<64x8xf32> -> vector<64x8xf32>
    %75 = arith.addf %68, %74 : vector<64x8xf32>
    %c0_95 = arith.constant 0 : index
    %c0_96 = arith.constant 0 : index
    %c2_97 = arith.constant 2 : index
    %c0_98 = arith.constant 0 : index
    %76 = vector.load %arg3[%c0_95, %c0_96, %c2_97, %c0_98] : memref<1x10x10x8xbf16, #tpu.memory_space<vmem>>, vector<1x8x8x8xbf16>
    %77 = vector.shape_cast %76 : vector<1x8x8x8xbf16> to vector<8x8x8xbf16>
    %78 = vector.shape_cast %77 : vector<8x8x8xbf16> to vector<64x8xbf16>
    %c0_99 = arith.constant 0 : index
    %c2_100 = arith.constant 2 : index
    %c0_101 = arith.constant 0 : index
    %c0_102 = arith.constant 0 : index
    %79 = vector.load %arg4[%c0_99, %c2_100, %c0_101, %c0_102] : memref<3x3x8x8xbf16, #tpu.memory_space<vmem>>, vector<1x1x8x8xbf16>
    %80 = vector.shape_cast %79 : vector<1x1x8x8xbf16> to vector<8x8xbf16>
    %cst_103 = arith.constant dense<0.000000e+00> : vector<64x8xf32>
    %81 = tpu.matmul %78, %80, %cst_103 {dimension_numbers = #tpu.dot_dimension_numbers<[1], [0], [0], [1], [0, 0, 1, 1], [], []>} : vector<64x8xbf16>, vector<8x8xbf16>, vector<64x8xf32> -> vector<64x8xf32>
    %82 = arith.addf %75, %81 : vector<64x8xf32>
    %c0_104 = arith.constant 0 : index
    %c1_105 = arith.constant 1 : index
    %c0_106 = arith.constant 0 : index
    %c0_107 = arith.constant 0 : index
    %83 = vector.load %arg3[%c0_104, %c1_105, %c0_106, %c0_107] : memref<1x10x10x8xbf16, #tpu.memory_space<vmem>>, vector<1x8x8x8xbf16>
    %84 = vector.shape_cast %83 : vector<1x8x8x8xbf16> to vector<8x8x8xbf16>
    %85 = vector.shape_cast %84 : vector<8x8x8xbf16> to vector<64x8xbf16>
    %c1_108 = arith.constant 1 : index
    %c0_109 = arith.constant 0 : index
    %c0_110 = arith.constant 0 : index
    %c0_111 = arith.constant 0 : index
    %86 = vector.load %arg4[%c1_108, %c0_109, %c0_110, %c0_111] : memref<3x3x8x8xbf16, #tpu.memory_space<vmem>>, vector<1x1x8x8xbf16>
    %87 = vector.shape_cast %86 : vector<1x1x8x8xbf16> to vector<8x8xbf16>
    %cst_112 = arith.constant dense<0.000000e+00> : vector<64x8xf32>
    %88 = tpu.matmul %85, %87, %cst_112 {dimension_numbers = #tpu.dot_dimension_numbers<[1], [0], [0], [1], [0, 0, 1, 1], [], []>} : vector<64x8xbf16>, vector<8x8xbf16>, vector<64x8xf32> -> vector<64x8xf32>
    %89 = arith.addf %82, %88 : vector<64x8xf32>
    %c0_113 = arith.constant 0 : index
    %c1_114 = arith.constant 1 : index
    %c1_115 = arith.constant 1 : index
    %c0_116 = arith.constant 0 : index
    %90 = vector.load %arg3[%c0_113, %c1_114, %c1_115, %c0_116] : memref<1x10x10x8xbf16, #tpu.memory_space<vmem>>, vector<1x8x8x8xbf16>
    %91 = vector.shape_cast %90 : vector<1x8x8x8xbf16> to vector<8x8x8xbf16>
    %92 = vector.shape_cast %91 : vector<8x8x8xbf16> to vector<64x8xbf16>
    %c1_117 = arith.constant 1 : index
    %c1_118 = arith.constant 1 : index
    %c0_119 = arith.constant 0 : index
    %c0_120 = arith.constant 0 : index
    %93 = vector.load %arg4[%c1_117, %c1_118, %c0_119, %c0_120] : memref<3x3x8x8xbf16, #tpu.memory_space<vmem>>, vector<1x1x8x8xbf16>
    %94 = vector.shape_cast %93 : vector<1x1x8x8xbf16> to vector<8x8xbf16>
    %cst_121 = arith.constant dense<0.000000e+00> : vector<64x8xf32>
    %95 = tpu.matmul %92, %94, %cst_121 {dimension_numbers = #tpu.dot_dimension_numbers<[1], [0], [0], [1], [0, 0, 1, 1], [], []>} : vector<64x8xbf16>, vector<8x8xbf16>, vector<64x8xf32> -> vector<64x8xf32>
    %96 = arith.addf %89, %95 : vector<64x8xf32>
    %c0_122 = arith.constant 0 : index
    %c1_123 = arith.constant 1 : index
    %c2_124 = arith.constant 2 : index
    %c0_125 = arith.constant 0 : index
    %97 = vector.load %arg3[%c0_122, %c1_123, %c2_124, %c0_125] : memref<1x10x10x8xbf16, #tpu.memory_space<vmem>>, vector<1x8x8x8xbf16>
    %98 = vector.shape_cast %97 : vector<1x8x8x8xbf16> to vector<8x8x8xbf16>
    %99 = vector.shape_cast %98 : vector<8x8x8xbf16> to vector<64x8xbf16>
    %c1_126 = arith.constant 1 : index
    %c2_127 = arith.constant 2 : index
    %c0_128 = arith.constant 0 : index
    %c0_129 = arith.constant 0 : index
    %100 = vector.load %arg4[%c1_126, %c2_127, %c0_128, %c0_129] : memref<3x3x8x8xbf16, #tpu.memory_space<vmem>>, vector<1x1x8x8xbf16>
    %101 = vector.shape_cast %100 : vector<1x1x8x8xbf16> to vector<8x8xbf16>
    %cst_130 = arith.constant dense<0.000000e+00> : vector<64x8xf32>
    %102 = tpu.matmul %99, %101, %cst_130 {dimension_numbers = #tpu.dot_dimension_numbers<[1], [0], [0], [1], [0, 0, 1, 1], [], []>} : vector<64x8xbf16>, vector<8x8xbf16>, vector<64x8xf32> -> vector<64x8xf32>
    %103 = arith.addf %96, %102 : vector<64x8xf32>
    %c0_131 = arith.constant 0 : index
    %c2_132 = arith.constant 2 : index
    %c0_133 = arith.constant 0 : index
    %c0_134 = arith.constant 0 : index
    %104 = vector.load %arg3[%c0_131, %c2_132, %c0_133, %c0_134] : memref<1x10x10x8xbf16, #tpu.memory_space<vmem>>, vector<1x8x8x8xbf16>
    %105 = vector.shape_cast %104 : vector<1x8x8x8xbf16> to vector<8x8x8xbf16>
    %106 = vector.shape_cast %105 : vector<8x8x8xbf16> to vector<64x8xbf16>
    %c2_135 = arith.constant 2 : index
    %c0_136 = arith.constant 0 : index
    %c0_137 = arith.constant 0 : index
    %c0_138 = arith.constant 0 : index
    %107 = vector.load %arg4[%c2_135, %c0_136, %c0_137, %c0_138] : memref<3x3x8x8xbf16, #tpu.memory_space<vmem>>, vector<1x1x8x8xbf16>
    %108 = vector.shape_cast %107 : vector<1x1x8x8xbf16> to vector<8x8xbf16>
    %cst_139 = arith.constant dense<0.000000e+00> : vector<64x8xf32>
    %109 = tpu.matmul %106, %108, %cst_139 {dimension_numbers = #tpu.dot_dimension_numbers<[1], [0], [0], [1], [0, 0, 1, 1], [], []>} : vector<64x8xbf16>, vector<8x8xbf16>, vector<64x8xf32> -> vector<64x8xf32>
    %110 = arith.addf %103, %109 : vector<64x8xf32>
    %c0_140 = arith.constant 0 : index
    %c2_141 = arith.constant 2 : index
    %c1_142 = arith.constant 1 : index
    %c0_143 = arith.constant 0 : index
    %111 = vector.load %arg3[%c0_140, %c2_141, %c1_142, %c0_143] : memref<1x10x10x8xbf16, #tpu.memory_space<vmem>>, vector<1x8x8x8xbf16>
    %112 = vector.shape_cast %111 : vector<1x8x8x8xbf16> to vector<8x8x8xbf16>
    %113 = vector.shape_cast %112 : vector<8x8x8xbf16> to vector<64x8xbf16>
    %c2_144 = arith.constant 2 : index
    %c1_145 = arith.constant 1 : index
    %c0_146 = arith.constant 0 : index
    %c0_147 = arith.constant 0 : index
    %114 = vector.load %arg4[%c2_144, %c1_145, %c0_146, %c0_147] : memref<3x3x8x8xbf16, #tpu.memory_space<vmem>>, vector<1x1x8x8xbf16>
    %115 = vector.shape_cast %114 : vector<1x1x8x8xbf16> to vector<8x8xbf16>
    %cst_148 = arith.constant dense<0.000000e+00> : vector<64x8xf32>
    %116 = tpu.matmul %113, %115, %cst_148 {dimension_numbers = #tpu.dot_dimension_numbers<[1], [0], [0], [1], [0, 0, 1, 1], [], []>} : vector<64x8xbf16>, vector<8x8xbf16>, vector<64x8xf32> -> vector<64x8xf32>
    %117 = arith.addf %110, %116 : vector<64x8xf32>
    %c0_149 = arith.constant 0 : index
    %c2_150 = arith.constant 2 : index
    %c2_151 = arith.constant 2 : index
    %c0_152 = arith.constant 0 : index
    %118 = vector.load %arg3[%c0_149, %c2_150, %c2_151, %c0_152] : memref<1x10x10x8xbf16, #tpu.memory_space<vmem>>, vector<1x8x8x8xbf16>
    %119 = vector.shape_cast %118 : vector<1x8x8x8xbf16> to vector<8x8x8xbf16>
    %120 = vector.shape_cast %119 : vector<8x8x8xbf16> to vector<64x8xbf16>
    %c2_153 = arith.constant 2 : index
    %c2_154 = arith.constant 2 : index
    %c0_155 = arith.constant 0 : index
    %c0_156 = arith.constant 0 : index
    %121 = vector.load %arg4[%c2_153, %c2_154, %c0_155, %c0_156] : memref<3x3x8x8xbf16, #tpu.memory_space<vmem>>, vector<1x1x8x8xbf16>
    %122 = vector.shape_cast %121 : vector<1x1x8x8xbf16> to vector<8x8xbf16>
    %cst_157 = arith.constant dense<0.000000e+00> : vector<64x8xf32>
    %123 = tpu.matmul %120, %122, %cst_157 {dimension_numbers = #tpu.dot_dimension_numbers<[1], [0], [0], [1], [0, 0, 1, 1], [], []>} : vector<64x8xbf16>, vector<8x8xbf16>, vector<64x8xf32> -> vector<64x8xf32>
    %124 = arith.addf %117, %123 : vector<64x8xf32>
    %125 = vector.shape_cast %124 : vector<64x8xf32> to vector<8x8x8xf32>
    %126 = arith.truncf %125 : vector<8x8x8xf32> to vector<8x8x8xbf16>
    %c0_158 = arith.constant 0 : index
    %c0_159 = arith.constant 0 : index
    %c0_160 = arith.constant 0 : index
    %c0_161 = arith.constant 0 : index
    %127 = vector.load %arg5[%c0_158, %c0_159, %c0_160, %c0_161] : memref<1x8x8x8xbf16, #tpu.memory_space<vmem>>, vector<1x8x8x8xbf16>
    %128 = vector.shape_cast %127 : vector<1x8x8x8xbf16> to vector<8x8x8xbf16>
    %129 = vector.shape_cast %126 : vector<8x8x8xbf16> to vector<1x8x8x8xbf16>
    tpu.vector_store %arg5[%c0_158, %c0_159, %c0_160, %c0_161], %129 {strides = array<i32>} : memref<1x8x8x8xbf16, #tpu.memory_space<vmem>>, vector<1x8x8x8xbf16>,
    %cst_162 = arith.constant dense<0.000000e+00> : vector<8xf32>
    %130 = vector.multi_reduction <add>, %124, %cst_162 [0] : vector<64x8xf32> to vector<8xf32>
    %131 = vector.shape_cast %130 : vector<8xf32> to vector<1x8xf32>
    %c0_163 = arith.constant 0 : index
    %c0_164 = arith.constant 0 : index
    %c0_165 = arith.constant 0 : index
    %132 = vector.load %arg6[%c0_163, %c0_164, %c0_165] : memref<1x1x8xf32, #tpu.memory_space<vmem>>, vector<1x1x8xf32>
    %133 = vector.shape_cast %132 : vector<1x1x8xf32> to vector<1x8xf32>
    %134 = vector.shape_cast %131 : vector<1x8xf32> to vector<1x1x8xf32>
    tpu.vector_store %arg6[%c0_163, %c0_164, %c0_165], %134 {strides = array<i32>} : memref<1x1x8xf32, #tpu.memory_space<vmem>>, vector<1x1x8xf32>,
    %135 = arith.mulf %124, %124 : vector<64x8xf32>
    %cst_166 = arith.constant dense<0.000000e+00> : vector<8xf32>
    %136 = vector.multi_reduction <add>, %135, %cst_166 [0] : vector<64x8xf32> to vector<8xf32>
    %137 = vector.shape_cast %136 : vector<8xf32> to vector<1x8xf32>
    %c0_167 = arith.constant 0 : index
    %c0_168 = arith.constant 0 : index
    %c0_169 = arith.constant 0 : index
    %138 = vector.load %arg7[%c0_167, %c0_168, %c0_169] : memref<1x1x8xf32, #tpu.memory_space<vmem>>, vector<1x1x8xf32>
    %139 = vector.shape_cast %138 : vector<1x1x8xf32> to vector<1x8xf32>
    %140 = vector.shape_cast %137 : vector<1x8xf32> to vector<1x1x8xf32>
    tpu.vector_store %arg7[%c0_167, %c0_168, %c0_169], %140 {strides = array<i32>} : memref<1x1x8xf32, #tpu.memory_space<vmem>>, vector<1x1x8xf32>,
    return
  }
  func.func @transform_0(%arg0: i32) -> (i32, i32, i32, i32) {
    %c0_i32 = arith.constant 0 : i32
    %c0_i32_0 = arith.constant 0 : i32
    %c0_i32_1 = arith.constant 0 : i32
    %c0_i32_2 = arith.constant 0 : i32
    return %arg0, %c0_i32, %c0_i32_0, %c0_i32_1 : i32, i32, i32, i32
  }
  func.func @transform_1(%arg0: i32) -> (i32, i32, i32, i32) {
    %c0_i32 = arith.constant 0 : i32
    %c0_i32_0 = arith.constant 0 : i32
    %c0_i32_1 = arith.constant 0 : i32
    %c0_i32_2 = arith.constant 0 : i32
    %c0_i32_3 = arith.constant 0 : i32
    return %c0_i32, %c0_i32_0, %c0_i32_1, %c0_i32_2 : i32, i32, i32, i32
  }
  func.func @transform_2(%arg0: i32) -> (i32, i32, i32, i32) {
    %c0_i32 = arith.constant 0 : i32
    %c0_i32_0 = arith.constant 0 : i32
    %c0_i32_1 = arith.constant 0 : i32
    %c0_i32_2 = arith.constant 0 : i32
    return %arg0, %c0_i32, %c0_i32_0, %c0_i32_1 : i32, i32, i32, i32
  }
  func.func @transform_3(%arg0: i32) -> (i32, i32, i32, i32) {
    %c0_i32 = arith.constant 0 : i32
    %c0_i32_0 = arith.constant 0 : i32
    %c0_i32_1 = arith.constant 0 : i32
    %c0_i32_2 = arith.constant 0 : i32
    %c0_i32_3 = arith.constant 0 : i32
    return %c0_i32, %c0_i32_0, %c0_i32_1, %c0_i32_2 : i32, i32, i32, i32
  }
  func.func @transform_4(%arg0: i32) -> (i32, i32, i32, i32) {
    %c0_i32 = arith.constant 0 : i32
    %c0_i32_0 = arith.constant 0 : i32
    %c0_i32_1 = arith.constant 0 : i32
    %c0_i32_2 = arith.constant 0 : i32
    return %arg0, %c0_i32, %c0_i32_0, %c0_i32_1 : i32, i32, i32, i32
  }
  func.func @transform_5(%arg0: i32) -> (i32, i32, i32) {
    %c0_i32 = arith.constant 0 : i32
    %c0_i32_0 = arith.constant 0 : i32
    %c0_i32_1 = arith.constant 0 : i32
    return %arg0, %c0_i32, %c0_i32_0 : i32, i32, i32
  }
  func.func @transform_6(%arg0: i32) -> (i32, i32, i32) {
    %c0_i32 = arith.constant 0 : i32
    %c0_i32_0 = arith.constant 0 : i32
    %c0_i32_1 = arith.constant 0 : i32
    return %arg0, %c0_i32, %c0_i32_0 : i32, i32, i32
  }
}

</mosaic_0001>

<bundles_post_ra>
// kernel: tpu_custom_call.1
= control target key start
LH: loop header
LB: loop body
LE: loop exit
PB: predicated region body
PF: predicated region fallthrough
CT: control target
= control target key end

     0   :  { %12 = vsyncpa [#allocation3], 0  ;;  %s4611_s0 = inlined_call_operand.vmem [shape: bf16[2,10,10,8], index: 0, kind: input, shape index: {}]   ;;  %s4612_s1 = inlined_call_operand.vmem [shape: bf16[3,3,8,8], index: 1, kind: input, shape index: {}]   ;;  %s4613_s2 = inlined_call_operand.vmem [shape: bf16[2,10,10,8], index: 2, kind: input, shape index: {}]   ;;  %s4614_s3 = inlined_call_operand.vmem [shape: bf16[3,3,8,8], index: 3, kind: input, shape index: {}]   ;;  %s4615_s4 = inlined_call_operand.hbm [shape: bf16[2,8,8,8], index: 4, kind: output, shape index: {0}]   ;;  %s4616_s5 = inlined_call_operand.hbm [shape: f32[2,1,8], index: 5, kind: output, shape index: {1}]   ;;  %s4617_s6 = inlined_call_operand.hbm [shape: f32[2,1,8], index: 6, kind: output, shape index: {2}]  }
   0x1   :  { %14 = vsyncpa [#allocation3 + $0x1], 0 }
   0x2   :  { %15 = vsyncpa [#allocation5], 0 }
   0x3   :  { %17 = vsyncpa [#allocation5 + $0x1], 0  ;;  %s3520_s21 = smov 0   ;;  %s3522_s22 = smov 0  }
   0x4   :  { %s3524_s23 = smov 0   ;;  %s3526_s24 = smov 0  }
   0x5 LB: > { %s3541_s25 = sadd.s32 4294967295, %s3481_s24   ;;  %s4618_s26 = sadd.s32 4294967294, %s3481_s24   ;;  %s3481_s24 = sphi %s3526_s24, %s4629_s24   ;;  %s3477_s23 = sphi %s3524_s23, %s4628_s23   ;;  %s3473_s22 = sphi %s3522_s22, %s4627_s22   ;;  %s3469_s21 = sphi %s3520_s21, %s4626_s21  }
   0x6   : > { %s3545_s27 = sadd.s32 1, %s3481_s24   ;;  %s124_s28 = sadd.s32 1, %s3477_s23 }
   0x7   : > { %s121_s29 = ssub.s32 %s3481_s24, %s3545_s27  ;;  %p134_p0 = scmp.ne.s32.totalorder %s3477_s23, %s3473_s22 }
   0x8   : > { %p122_p1 = scmp.eq.s32.totalorder %s121_s29, 0  ;;  %p135_p2 = scmp.eq.s32.totalorder %s3541_s25, 1 }
   0x9   : > { %p140_p3 = scmp.ne.s32.totalorder %s3473_s22, %s3469_s21  ;;  %p141_p4 = scmp.eq.s32.totalorder %s4618_s26, 1 }
   0xa   : > { %s3558_s30 = scalar_select %p122_p1, %s3477_s23, %s124_s28  }
   0xb   : > { %p3560_p5 = por %p135_p2, %p134_p0  ;;  %p3564_p6 = por %p141_p4, %p140_p3 }
   0xc   : > { %p2911_p7 = scmp.ge.s32.totalorder %s3481_s24, 1  ;;  %p233_p8 = scmp.lt.s32.totalorder %s3481_s24, 3 }
   0xe   : > { %p234_p9 = pnand %p2911_p7, %p233_p8 }
   0xf   : > { %p276_p10 = scmp.lt.s32.totalorder (!%p234_p9), %s3541_s25, 1  ;;  %s4461_s15 = sand.u32 (!%p234_p9), 1, %s3473_s22  }
  0x10   : > { %237 = sbr.rel (%p234_p9) target bundleno = 498 (0x1f2), region = 36  ;;  %s2912_s16 = sshll.u32 (!%p234_p9), %s4461_s15, 5 }
  0x11   : > { %s4466_s17 = scalar_lea.vmem (!%p234_p9), [#allocation2], %s2912_s16  ;;  %s3304_s18 = sshll.u32 (!%p234_p9), %s3541_s25, 5 }
  0x12   : > { %s2732_s9 = scalar_lea.sflag (!%p234_p9), [#allocation3], %s4461_s15  ;;  %s3379_s16 = scalar_lea.hbm (!%p234_p9), %s4615_s4, 64 }
  0x15   : > { %v295_v0 = vld [vmem:[%s4612_s1] sm:$0xf]  ;;  %vm446_vm0 = vcmask 1043456   ;;  %v2915_v2 = vld [vmem:[%s4612_s1 + $0x4] sm:$0xf]  ;;  %s3579_s13 = scalar_select %p276_p10, %s3541_s25, 1 }
  0x16   : > { %v512_v1 = vsel %vm446_vm0, %v295_v0, 0  ;;  %v448_v3 = vsel %vm446_vm0, %v2915_v2, 0  ;;  %v2948_v4 = vld [vmem:[%s4612_s1 + $0x8] sm:$0xf]  ;;  %v2961_v6 = vld [vmem:[%s4612_s1 + $0xc] sm:$0xf] }
  0x17   : > { %3306 = vmatpush.bf16.msra.mxu3 %v512_v1  ;;  %521 = vmatpush.bf16.msra.mxu1 %v512_v1  ;;  %v629_v5 = vsel %vm446_vm0, %v2948_v4, 0  ;;  %v2998_v7 = vld [vmem:[%s4612_s1 + $0x10] sm:$0xf]  ;;  %s3307_s20 = smul.u32 80, %s3579_s13  ;;  %v712_v8 = vsel %vm446_vm0, %v2961_v6, 0  ;;  %vm433_vm1 = vcmask 64512   ;;  %s2751_s13 = scalar_lea.hbm %s4615_s4, %s3304_s18 }
  0x18   : > { %3305 = vmatpush.bf16.msra.mxu2 %v448_v3  ;;  %457 = vmatpush.bf16.msra.mxu0 %v448_v3  ;;  %v906_v9 = vsel %vm446_vm0, %v2998_v7, 0  ;;  %v3019_v10 = vld [vmem:[%s4612_s1 + $0x14] sm:$0xf]  ;;  %vm304_vm2 = vsmask.f32 3328  ;;  %vm567_vm5 = vcmask 1042432  }
  0x19   : > { %v1028_v11 = vsel %vm446_vm0, %v3019_v10, 0  ;;  %s3604_s11 = scalar_lea.vmem %s4611_s0, %s3307_s20  ;;  %vm305_vm3 = vsmask.f32 7440  ;;  %vm568_vm6 = vcmask 1046532   ;;  %s3875_s28 = scalar_lea.vmem %s4613_s2, %s3307_s20  ;;  %vm2669_vm8 = vcmask 60416  }
  0x1a   : > { %v2930_v12 = vld [vmem:[%s3604_s11 + $0x20] sm:$0xf]  ;;  %v3282_v13 = vld [vmem:[%s3604_s11 + $0x24] sm:$0xf0]  ;;  %v3611_v17 = vld [vmem:[%s3604_s11 + $0x24] sm:$0x1] }
  0x1b   : > { %721 = vmatpush.bf16.msrb.mxu3 %v712_v8  ;;  %1037 = vmatpush.bf16.msrb.mxu1 %v1028_v11  ;;  %v291_v14 = vld [vmem:[%s3604_s11 + $0x20] sm:$0xf]  ;;  %v2931_v15 = vor.u32 %v3282_v13, %v2930_v12  ;;  %v292_v16 = vld [vmem:[%s3604_s11 + $0x28] sm:$0xf]  ;;  %v3614_v18 = vld [vmem:[%s3604_s11 + $0x2c] sm:$0x1] }
  0x1c   : > { %638 = vmatpush.bf16.msrb.mxu2 %v629_v5  ;;  %915 = vmatpush.bf16.msrb.mxu0 %v906_v9  ;;  %v364_v19 = vshrl.u32 %v291_v14, 16  ;;  %v367_v20 = vshll.u32 %v291_v14, 16  ;;  %v373_v21 = vshll.u32 %v3611_v17, 16  ;;  %v378_v22 = vshrl.u32 %v292_v16, 16  ;;  %v287_v23 = vld [vmem:[%s3604_s11] sm:$0xf]  ;;  %vm3632_vm4 = vmor %vm304_vm2, %vm305_vm3 }
  0x1d   : > { %2938 = vmatmul.msk.bf16.vlgmr.msra.gmra.mxu3 %vm433_vm1, %v2931_v15  ;;  %v381_v24 = vshll.u32 %v292_v16, 16  ;;  %v387_v25 = vshll.u32 %v3614_v18, 16  ;;  %v288_v26 = vld [vmem:[%s3604_s11 + $0x8] sm:$0xf]  ;;  %v3622_v27 = vld [vmem:[%s3604_s11 + $0x4] sm:$0x1]  ;;  %vm3713_vm7 = vmor %vm567_vm5, %vm568_vm6 }
  0x1e   : > { %v366_v28 = vrot.slane %v364_v19, 4  ;;  %v369_v29 = vrot.slane %v367_v20, 5  ;;  %v375_v30 = vrot.slane %v373_v21, 5  ;;  %v380_v31 = vrot.slane %v378_v22, 4  ;;  %v3625_v32 = vld [vmem:[%s3604_s11 + $0xc] sm:$0x1] }
  0x1f   : > { %v383_v33 = vrot.slane %v381_v24, 5  ;;  %v389_v34 = vrot.slane %v387_v25, 5  ;;  %v308_v35 = vshrl.u32 %v287_v23, 16  ;;  %v311_v36 = vshll.u32 %v287_v23, 16  ;;  %v2922_v37 = vld [vmem:[%s3604_s11] sm:$0xf] }
  0x20   : > { %v370_v38 = vor.u32 %v369_v29, %v366_v28  ;;  %v317_v39 = vshll.u32 %v3622_v27, 16  ;;  %v322_v40 = vshrl.u32 %v288_v26, 16  ;;  %v325_v41 = vshll.u32 %v288_v26, 16  ;;  %v3280_v42 = vld [vmem:[%s3604_s11 + $0x4] sm:$0xf0]  ;;  %s2752_s20 = sshll.u32 %s4466_s17, 4  ;;  %s4523_s20 = int_to_ptr.vmem [resolvable:$true] %s2752_s20 }
  0x21   : > { %v384_v44 = vor.u32 %v383_v33, %v380_v31  ;;  %v310_v45 = vrot.slane %v308_v35, 4  ;;  %v313_v46 = vrot.slane %v311_v36, 5  ;;  %v331_v47 = vshll.u32 %v3625_v32, 16  ;;  %v2934_v48 = vld [vmem:[%s3604_s11 + $0x30] sm:$0xf]  ;;  %s2754_s29 = sshll.u32 %s2751_s13, 4  ;;  %s2755_s29 = int_to_ptr.hbm [resolvable:$true] %s2754_s29 }
  0x22   : > { %v371_v49 = vrot.slane %v370_v38, 4  ;;  %v324_v50 = vrot.slane %v322_v40, 4  ;;  %v327_v51 = vrot.slane %v325_v41, 5  ;;  %v3283_v52 = vld [vmem:[%s3604_s11 + $0x34] sm:$0xf0]  ;;  %v319_v55 = vrot.slane %v317_v39, 5 }
  0x23   : > { %v385_v53 = vrot.slane %v384_v44, 4  ;;  %v314_v54 = vor.u32 %v313_v46, %v310_v45  ;;  %v293_v56 = vld [vmem:[%s3604_s11 + $0x30] sm:$0xf]  ;;  %v333_v59 = vrot.slane %v331_v47, 5  ;;  %v2923_v60 = vor.u32 %v3280_v42, %v2922_v37  ;;  %v294_v61 = vld [vmem:[%s3604_s11 + $0x38] sm:$0xf] }
  0x24   : > { %v376_v57 = vsel %vm3632_vm4, %v371_v49, %v375_v30  ;;  %v328_v58 = vor.u32 %v327_v51, %v324_v50  ;;  %v3644_v62 = vld [vmem:[%s3604_s11 + $0x34] sm:$0x1]  ;;  %v2935_v2 = vor.u32 %v3283_v52, %v2934_v48  ;;  %v3650_v5 = vld [vmem:[%s3604_s11 + $0x3c] sm:$0x1]  ;;  %v392_v6 = vshrl.u32 %v293_v56, 16  ;;  %s3373_s10 = sshra.s32 %s2755_s29, 4  ;;  %s3374_s10 = int_to_ptr.hbm [resolvable:$true] %s3373_s10 }
  0x25   : > { %v390_v63 = vsel %vm3632_vm4, %v385_v53, %v389_v34  ;;  %v425_v0 = vunpack.c.l.b16 %v376_v57  ;;  %v315_v1 = vrot.slane %v314_v54, 4  ;;  %2936 = vmatmul.msk.bf16.vlgmr.msra.gmra.mxu1 %vm433_vm1, %v2923_v60  ;;  %v395_v7 = vshll.u32 %v293_v56, 16  ;;  %v289_v12 = vld [vmem:[%s3604_s11 + $0x10] sm:$0xf]  ;;  %v290_v19 = vld [vmem:[%s3604_s11 + $0x18] sm:$0xf]  ;;  %p3380_p0 = scmp.lt.s32.totalorder %s3374_s10, %s4615_s4 }
  0x26   : > { %v426_v3 = vunpack.c.l.b16 %v390_v63  ;;  %v329_v4 = vrot.slane %v328_v58, 4  ;;  %v401_v9 = vshll.u32 %v3644_v62, 16  ;;  %v406_v10 = vshrl.u32 %v294_v61, 16  ;;  %v3660_v20 = vld [vmem:[%s3604_s11 + $0x14] sm:$0x1]  ;;  %s3375_s12 = scalar_lea.hbm %s3374_s10, 32 }
  0x27   : > { %v320_v8 = vsel %vm3632_vm4, %v315_v1, %v319_v55  ;;  %v409_v11 = vshll.u32 %v294_v61, 16  ;;  %v394_v16 = vrot.slane %v392_v6, 4  ;;  %v397_v22 = vrot.slane %v395_v7, 5  ;;  %v3665_v33 = vld [vmem:[%s3604_s11 + $0x1c] sm:$0x1]  ;;  %p3376_p11 = scmp.ne.s32.totalorder %s3374_s10, %s3375_s12  ;;  %p3381_p1 = scmp.lt.s32.totalorder %s3379_s16, %s3375_s12 }
  0x28   : > { %v431_v13 = vpack.c.b16 %v426_v3, %v425_v0  ;;  %v334_v14 = vsel %vm3632_vm4, %v329_v4, %v333_v59  ;;  %v421_v15 = vunpack.c.l.b16 %v320_v8  ;;  %v403_v23 = vrot.slane %v401_v9, 5  ;;  %v2926_v44 = vld [vmem:[%s3604_s11 + $0x10] sm:$0xf]  ;;  %v3281_v49 = vld [vmem:[%s3604_s11 + $0x14] sm:$0xf0] }
  0x29   : > { %v422_v21 = vunpack.c.l.b16 %v334_v14  ;;  %v408_v24 = vrot.slane %v406_v10, 4  ;;  %v411_v25 = vrot.slane %v409_v11, 5  ;;  %v415_v26 = vshll.u32 %v3650_v5, 16  ;;  %v3032_v52 = vld [vmem:[%s4612_s1 + $0x18] sm:$0xf]  ;;  %p3377_p12 = pnand %p3376_p11, %p3560_p5  ;;  %p3382_p2 = por %p3381_p1, %p3380_p0 }
  0x2a   : > { %2918 = vmatmul.msk.bf16.vlgmr.msra.gmra.mxu2 %vm433_vm1, %v431_v13  ;;  %v336_v28 = vshrl.u32 %v289_v12, 16  ;;  %v339_v29 = vshll.u32 %v289_v12, 16  ;;  %v398_v31 = vor.u32 %v397_v22, %v394_v16  ;;  %v345_v34 = vshll.u32 %v3660_v20, 16  ;;  %v2982_v53 = vld [vmem:[%s3604_s11 + $0x8] sm:$0xf] }
  0x2b   : > { %v429_v30 = vpack.c.b16 %v422_v21, %v421_v15  ;;  %v350_v35 = vshrl.u32 %v290_v19, 16  ;;  %v412_v36 = vor.u32 %v411_v25, %v408_v24  ;;  %v417_v37 = vrot.slane %v415_v26, 5  ;;  %v3683_v57 = vld [vmem:[%s3604_s11 + $0x8] sm:$0xf]  ;;  %v3284_v58 = vld [vmem:[%s3604_s11 + $0xc] sm:$0xf0]  ;;  %p3378_p13 = pneg %p3377_p12 }
  0x2c   : > { %v338_v38 = vrot.slane %v336_v28, 4  ;;  %v341_v39 = vrot.slane %v339_v29, 5  ;;  %v399_v40 = vrot.slane %v398_v31, 4  ;;  %v353_v42 = vshll.u32 %v290_v19, 16  ;;  %v2984_v3 = vld [vmem:[%s3604_s11 + $0x10] sm:$0xf] }
  0x2d   : > { %2916 = vmatmul.msk.bf16.vlgmr.msra.gmra.mxu0 %vm433_vm1, %v429_v30  ;;  %2939 = vmatmul.msk.bf16.gmra.mxu3 %vm433_vm1, %v2935_v2  ;;  %v352_v41 = vrot.slane %v350_v35, 4  ;;  %v413_v45 = vrot.slane %v412_v36, 4  ;;  %v347_v47 = vrot.slane %v345_v34, 5  ;;  %v359_v48 = vshll.u32 %v3665_v33, 16  ;;  %v543_v2 = vld [vmem:[%s3604_s11] sm:$0xe]  ;;  %p3383_p3 = pnand %p3382_p2, %p3378_p13 }
  0x2e   : > { %v342_v46 = vor.u32 %v341_v39, %v338_v38  ;;  %v404_v50 = vsel %vm3632_vm4, %v399_v40, %v403_v23  ;;  %v355_v51 = vrot.slane %v353_v42, 5  ;;  %v572_v54 = vrot.slane %v3622_v27, 5  ;;  %v544_v9 = vld [vmem:[%s3604_s11 + $0x8] sm:$0xe]  ;;  %v2983_v10 = vld [vmem:[%s3604_s11 + $0xc] sm:$0x1] }
  0x2f   : > { %v418_v55 = vsel %vm3632_vm4, %v413_v45, %v417_v37  ;;  %v427_v59 = vunpack.c.l.b16 %v404_v50  ;;  %v361_v61 = vrot.slane %v359_v48, 5  ;;  %v2927_v63 = vor.u32 %v3281_v49, %v2926_v44  ;;  %v3069_v14 = vld [vmem:[%s4612_s1 + $0x1c] sm:$0xf]  ;;  %v2985_v16 = vld [vmem:[%s3604_s11 + $0x14] sm:$0x1] }
  0x30   : > { %v343_v56 = vrot.slane %v342_v46, 4  ;;  %v356_v60 = vor.u32 %v355_v51, %v352_v41  ;;  %v428_v0 = vunpack.c.l.b16 %v418_v55  ;;  %v1111_v27 = vsel %vm446_vm0, %v3032_v52, 0  ;;  %v3003_v25 = vld [vmem:[%s3604_s11 + $0x8] sm:$0xe]  ;;  %v3004_v26 = vld [vmem:[%s3604_s11 + $0x10] sm:$0xe] }
  0x31   : > { %v768_v4 = vshrl.u32 %v2982_v53, 16  ;;  %v576_v6 = vrot.slane %v3625_v32, 5  ;;  %v2965_v8 = vor.u32 %v3284_v58, %v3683_v57  ;;  %1120 = vmatpush.bf16.msra.mxu2 %v1111_v27  ;;  %v771_v13 = vshll.u32 %v2982_v53, 16  ;;  %v3090_v34 = vld [vmem:[%s4612_s1 + $0x20] sm:$0xf] }
  0x32   : > { %v348_v1 = vsel %vm3632_vm4, %v343_v56, %v347_v47  ;;  %v357_v7 = vrot.slane %v356_v60, 4  ;;  %v2940_v32 = vrot.slane %v543_v2, 9  ;;  %v782_v19 = vshrl.u32 %v2984_v3, 16  ;;  %v1474_v39 = vld [vmem:[%s4614_s3] sm:$0xf] }
  0x33   : > { %v423_v11 = vunpack.c.l.b16 %v348_v1  ;;  %v770_v12 = vrot.slane %v768_v4, 4  ;;  %v432_v21 = vpack.c.b16 %v428_v0, %v427_v59  ;;  %v773_v23 = vrot.slane %v771_v13, 5  ;;  %v2986_v58 = vld [vmem:[%s3604_s11 + $0x18] sm:$0xf]  ;;  %v3285_v1 = vld [vmem:[%s3604_s11 + $0x1c] sm:$0xf0] }
  0x34   : > { %v362_v15 = vsel %vm3632_vm4, %v357_v7, %v361_v61  ;;  %v785_v24 = vshll.u32 %v2984_v3, 16  ;;  %v2941_v28 = vrot.slane %v544_v9, 9  ;;  %v777_v29 = vshll.u32 %v2983_v10, 16  ;;  %v2968_v0 = vld [vmem:[%s3604_s11 + $0x18] sm:$0xf] }
  0x35   : > { %v424_v22 = vunpack.c.l.b16 %v362_v15  ;;  %2937 = vmatmul.msk.bf16.gmra.mxu1 %vm433_vm1, %v2927_v63  ;;  %v784_v30 = vrot.slane %v782_v19, 4  ;;  %v1305_v31 = vsel %vm446_vm0, %v3069_v14, 0  ;;  %v774_v36 = vor.u32 %v773_v23, %v770_v12  ;;  %v2988_v63 = vld [vmem:[%s3604_s11 + $0x20] sm:$0xf]  ;;  %v545_v4 = vld [vmem:[%s3604_s11 + $0x10] sm:$0xe] }
  0x36   : > { %v787_v37 = vrot.slane %v785_v24, 5  ;;  %v791_v38 = vshll.u32 %v2985_v16, 16  ;;  %1314 = vmatpush.bf16.msra.mxu3 %v1305_v31  ;;  %v3011_v41 = vrot.slane %v3003_v25, 9  ;;  %v971_v42 = vrot.slane %v2983_v10, 5  ;;  %v3005_v10 = vld [vmem:[%s3604_s11 + $0x18] sm:$0xe] }
  0x37   : > { %v430_v35 = vpack.c.b16 %v424_v22, %v423_v11  ;;  %v3012_v44 = vrot.slane %v3004_v26, 9  ;;  %v975_v45 = vrot.slane %v2985_v16, 5  ;;  %v1427_v47 = vsel %vm446_vm0, %v3090_v34, 0  ;;  %v547_v11 = vld [vmem:[%s3604_s11 + $0x20] sm:$0xe] }
  0x38   : > { %v788_v46 = vor.u32 %v787_v37, %v784_v30  ;;  %v972_v48 = vsel %vm3713_vm7, %v3011_v41, %v971_v42  ;;  %1436 = vmatpush.bf16.msra.mxu0 %v1427_v47  ;;  %v1508_v50 = vsel %vm446_vm0, %v1474_v39, 0  ;;  %v573_v51 = vsel %vm3713_vm7, %v2940_v32, %v572_v54  ;;  %v548_v14 = vld [vmem:[%s3604_s11 + $0x28] sm:$0xe]  ;;  %v546_v16 = vld [vmem:[%s3604_s11 + $0x18] sm:$0xe] }
  0x39   : > { %v976_v49 = vsel %vm3713_vm7, %v3012_v44, %v975_v45  ;;  %v577_v52 = vsel %vm3713_vm7, %v2941_v28, %v576_v6  ;;  %1517 = vmatpush.bf16.msra.mxu1 %v1508_v50  ;;  %v775_v53 = vrot.slane %v774_v36, 4  ;;  %v779_v55 = vrot.slane %v777_v29, 5  ;;  %v3006_v22 = vld [vmem:[%s3604_s11 + $0x20] sm:$0xe]  ;;  %v2987_v23 = vld [vmem:[%s3604_s11 + $0x1c] sm:$0x1] }
  0x3a   : > { %2919 = vmatmul.msk.bf16.gmra.mxu2 %vm433_vm1, %v432_v21  ;;  %v789_v56 = vrot.slane %v788_v46, 4  ;;  %v793_v57 = vrot.slane %v791_v38, 5  ;;  %v1003_v59 = vunpack.c.l.b16 %v972_v48  ;;  %v1004_v60 = vunpack.c.l.b16 %v976_v49  ;;  %v2989_v29 = vld [vmem:[%s3604_s11 + $0x24] sm:$0x1] }
  0x3b   : > { %v604_v54 = vunpack.c.l.b16 %v573_v51  ;;  %v605_v61 = vunpack.c.l.b16 %v577_v52  ;;  %v796_v2 = vshrl.u32 %v2986_v58, 16  ;;  %v780_v27 = vsel %vm3632_vm4, %v775_v53, %v779_v55  ;;  %v2990_v52 = vld [vmem:[%s3604_s11 + $0x28] sm:$0xf] }
  0x3c   : > { %v794_v3 = vsel %vm3632_vm4, %v789_v56, %v793_v57  ;;  %v799_v6 = vshll.u32 %v2986_v58, 16  ;;  %v1011_v7 = vpack.c.b16 %v1004_v60, %v1003_v59  ;;  %v813_v9 = vshll.u32 %v2988_v63, 16  ;;  %v2992_v60 = vld [vmem:[%s3604_s11 + $0x30] sm:$0xf] }
  0x3d   : > { %2917 = vmatmul.msk.bf16.gmra.mxu0 %vm433_vm1, %v430_v35  ;;  %2978 = vmatmul.msk.bf16.vlgmr.msrb.gmra.mxu3 %vm433_vm1, %v2965_v8  ;;  %v810_v8 = vshrl.u32 %v2988_v63, 16  ;;  %v612_v12 = vpack.c.b16 %v605_v61, %v604_v54  ;;  %v2969_v13 = vor.u32 %v3285_v1, %v2968_v0  ;;  %v881_v15 = vunpack.c.l.b16 %v780_v27  ;;  %v550_v27 = vld [vmem:[%s3604_s11 + $0x38] sm:$0xe] }
  0x3e   : > { %v882_v32 = vunpack.c.l.b16 %v794_v3  ;;  %v2942_v19 = vrot.slane %v545_v4, 9  ;;  %v798_v21 = vrot.slane %v796_v2, 4  ;;  %v801_v24 = vrot.slane %v799_v6, 5  ;;  %v549_v2 = vld [vmem:[%s3604_s11 + $0x30] sm:$0xe] }
  0x3f   : > { %v3013_v25 = vrot.slane %v3005_v10, 9  ;;  %v2944_v26 = vrot.slane %v547_v11, 9  ;;  %v588_v28 = vrot.slane %v3611_v17, 5  ;;  %v812_v30 = vrot.slane %v810_v8, 4 }
  0x40   : > { %v815_v31 = vrot.slane %v813_v9, 5  ;;  %v979_v34 = vrot.slane %v2987_v23, 5  ;;  %v2945_v35 = vrot.slane %v548_v14, 9  ;;  %v580_v36 = vrot.slane %v3660_v20, 5 }
  0x41   : > { %v3014_v37 = vrot.slane %v3006_v22, 9  ;;  %v983_v38 = vrot.slane %v2989_v29, 5  ;;  %v589_v39 = vsel %vm3713_vm7, %v2944_v26, %v588_v28  ;;  %v2943_v41 = vrot.slane %v546_v16, 9 }
  0x42   : > { %v584_v42 = vrot.slane %v3665_v33, 5  ;;  %v805_v44 = vshll.u32 %v2987_v23, 16  ;;  %v592_v17 = vrot.slane %v3614_v18, 5  ;;  %v889_v45 = vpack.c.b16 %v882_v32, %v881_v15  ;;  %v3008_v32 = vld [vmem:[%s3604_s11 + $0x30] sm:$0xe] }
  0x43   : > { %v802_v46 = vor.u32 %v801_v24, %v798_v21  ;;  %v819_v47 = vshll.u32 %v2989_v29, 16  ;;  %v608_v48 = vunpack.c.l.b16 %v589_v39  ;;  %v816_v20 = vor.u32 %v815_v31, %v812_v30  ;;  %v2991_v21 = vld [vmem:[%s3604_s11 + $0x2c] sm:$0x1]  ;;  %v2972_v29 = vld [vmem:[%s3604_s11 + $0x28] sm:$0xf] }
  0x44   : > { %v980_v49 = vsel %vm3713_vm7, %v3013_v25, %v979_v34  ;;  %v593_v50 = vsel %vm3713_vm7, %v2945_v35, %v592_v17  ;;  %v984_v33 = vsel %vm3713_vm7, %v3014_v37, %v983_v38  ;;  %v581_v18 = vsel %vm3713_vm7, %v2942_v19, %v580_v36  ;;  %v2993_v30 = vld [vmem:[%s3604_s11 + $0x34] sm:$0x1]  ;;  %v3286_v34 = vld [vmem:[%s3604_s11 + $0x2c] sm:$0xf0] }
  0x45   : > { %3020 = vmatmul.msk.bf16.vlgmr.msrb.gmra.mxu1 %vm433_vm1, %v1011_v7  ;;  %v609_v51 = vunpack.c.l.b16 %v593_v50  ;;  %v585_v53 = vsel %vm3713_vm7, %v2943_v41, %v584_v42  ;;  %v807_v55 = vrot.slane %v805_v44, 5  ;;  %v803_v56 = vrot.slane %v802_v46, 4 }
  0x46   : > { %v821_v57 = vrot.slane %v819_v47, 5  ;;  %v1005_v58 = vunpack.c.l.b16 %v980_v49  ;;  %v817_v54 = vrot.slane %v816_v20, 4  ;;  %v1006_v61 = vunpack.c.l.b16 %v984_v33  ;;  %v2994_v33 = vld [vmem:[%s3604_s11 + $0x38] sm:$0xf] }
  0x47   : > { %v3767_v59 = vpack.c.b16 %v609_v51, %v608_v48  ;;  %v824_v63 = vshrl.u32 %v2990_v52, 16  ;;  %v596_v0 = vrot.slane %v3644_v62, 5  ;;  %v827_v1 = vshll.u32 %v2990_v52, 16 }
  0x48   : > { %v600_v3 = vrot.slane %v3650_v5, 5  ;;  %v838_v4 = vshrl.u32 %v2992_v60, 16  ;;  %v841_v6 = vshll.u32 %v2992_v60, 16  ;;  %v2946_v7 = vrot.slane %v549_v2, 9 }
  0x49   : > { %v606_v8 = vunpack.c.l.b16 %v581_v18  ;;  %v607_v9 = vunpack.c.l.b16 %v585_v53  ;;  %v2947_v10 = vrot.slane %v550_v27, 9  ;;  %v808_v11 = vsel %vm3632_vm4, %v803_v56, %v807_v55  ;;  %v2996_v18 = vld [vmem:[%s3604_s11 + $0x40] sm:$0xf]  ;;  %v3053_v56 = vld [vmem:[%s3604_s11 + $0x10] sm:$0xf] }
  0x4a   : > { %2949 = vmatmul.msk.bf16.vlgmr.msrb.gmra.mxu2 %vm433_vm1, %v612_v12  ;;  %v822_v12 = vsel %vm3632_vm4, %v817_v54, %v821_v57  ;;  %v1012_v62 = vpack.c.b16 %v1006_v61, %v1005_v58  ;;  %v597_v5 = vsel %vm3713_vm7, %v2946_v7, %v596_v0  ;;  %v826_v14 = vrot.slane %v824_v63, 4  ;;  %v3055_v57 = vld [vmem:[%s3604_s11 + $0x18] sm:$0xf] }
  0x4b   : > { %v829_v15 = vrot.slane %v827_v1, 5  ;;  %v601_v16 = vsel %vm3713_vm7, %v2947_v10, %v600_v3  ;;  %v610_v19 = vunpack.c.l.b16 %v597_v5  ;;  %v840_v22 = vrot.slane %v838_v4, 4  ;;  %v3009_v0 = vld [vmem:[%s3604_s11 + $0x38] sm:$0xe]  ;;  %v3010_v1 = vld [vmem:[%s3604_s11 + $0x40] sm:$0xe] }
  0x4c   : > { %v843_v23 = vrot.slane %v841_v6, 5  ;;  %v611_v24 = vunpack.c.l.b16 %v601_v16  ;;  %v613_v25 = vpack.c.b16 %v607_v9, %v606_v8  ;;  %v883_v26 = vunpack.c.l.b16 %v808_v11  ;;  %v2995_v8 = vld [vmem:[%s3604_s11 + $0x3c] sm:$0x1]  ;;  %v2976_v9 = vld [vmem:[%s3604_s11 + $0x38] sm:$0xf] }
  0x4d   : > { %2999 = vmatmul.msk.bf16.vlgmr.msrb.gmra.mxu0 %vm433_vm1, %v889_v45  ;;  %2979 = vmatmul.msk.bf16.gmra.mxu3 %vm433_vm1, %v2969_v13  ;;  %v3007_v13 = vld [vmem:[%s3604_s11 + $0x28] sm:$0xe]  ;;  %v884_v28 = vunpack.c.l.b16 %v822_v12  ;;  %v987_v35 = vrot.slane %v2991_v21, 5  ;;  %v3016_v36 = vrot.slane %v3008_v32, 9  ;;  %v991_v37 = vrot.slane %v2993_v30, 5 }
  0x4e   : > { %v3015_v31 = vrot.slane %v3007_v13, 9  ;;  %v3789_v38 = vpack.c.b16 %v611_v24, %v610_v19  ;;  %v830_v39 = vor.u32 %v829_v15, %v826_v14  ;;  %v833_v41 = vshll.u32 %v2991_v21, 16  ;;  %v2997_v10 = vld [vmem:[%s3604_s11 + $0x44] sm:$0x1]  ;;  %v3812_v16 = vld [vmem:[%s3604_s11 + $0x14] sm:$0x1] }
  0x4f   : > { %v844_v42 = vor.u32 %v843_v23, %v840_v22  ;;  %v847_v44 = vshll.u32 %v2993_v30, 16  ;;  %v890_v17 = vpack.c.b16 %v884_v28, %v883_v26  ;;  %v2973_v45 = vor.u32 %v3286_v34, %v2972_v29  ;;  %v3287_v19 = vld [vmem:[%s3604_s11 + $0x3c] sm:$0xf0]  ;;  %v3817_v26 = vld [vmem:[%s3604_s11 + $0x1c] sm:$0x1] }
  0x50   : > { %v988_v46 = vsel %vm3713_vm7, %v3015_v31, %v987_v35  ;;  %v992_v47 = vsel %vm3713_vm7, %v3016_v36, %v991_v37  ;;  %v831_v48 = vrot.slane %v830_v39, 4  ;;  %v835_v20 = vrot.slane %v833_v41, 5 }
  0x51   : > { %v845_v49 = vrot.slane %v844_v42, 4  ;;  %v849_v50 = vrot.slane %v847_v44, 5  ;;  %v1007_v51 = vunpack.c.l.b16 %v988_v46  ;;  %v1008_v52 = vunpack.c.l.b16 %v992_v47  ;;  %v3115_v44 = vld [vmem:[%s4614_s3 + $0x4] sm:$0xf] }
  0x52   : > { %v836_v53 = vsel %vm3632_vm4, %v831_v48, %v835_v20  ;;  %v852_v55 = vshrl.u32 %v2994_v33, 16  ;;  %v855_v60 = vshll.u32 %v2994_v33, 16  ;;  %v866_v54 = vshrl.u32 %v2996_v18, 16  ;;  %v3128_v33 = vld [vmem:[%s4614_s3 + $0x8] sm:$0xf] }
  0x53   : > { %v850_v58 = vsel %vm3632_vm4, %v845_v49, %v849_v50  ;;  %v869_v61 = vshll.u32 %v2996_v18, 16  ;;  %v1013_v63 = vpack.c.b16 %v1008_v52, %v1007_v51  ;;  %v1167_v2 = vshrl.u32 %v3053_v56, 16  ;;  %v3059_v51 = vld [vmem:[%s3604_s11 + $0x28] sm:$0xf]  ;;  %v3141_v52 = vld [vmem:[%s4614_s3 + $0xc] sm:$0xf] }
  0x54   : > { %v1170_v27 = vshll.u32 %v3053_v56, 16  ;;  %v1181_v3 = vshrl.u32 %v3055_v57, 16  ;;  %v1184_v4 = vshll.u32 %v3055_v57, 16  ;;  %v885_v6 = vunpack.c.l.b16 %v836_v53  ;;  %v3178_v57 = vld [vmem:[%s4614_s3 + $0x10] sm:$0xf] }
  0x55   : > { %3021 = vmatmul.msk.bf16.gmra.mxu1 %vm433_vm1, %v1012_v62  ;;  %v886_v7 = vunpack.c.l.b16 %v850_v58  ;;  %v854_v11 = vrot.slane %v852_v55, 4  ;;  %v857_v12 = vrot.slane %v855_v60, 5  ;;  %v868_v62 = vrot.slane %v866_v54, 4 }
  0x56   : > { %v871_v13 = vrot.slane %v869_v61, 5  ;;  %v3017_v5 = vrot.slane %v3009_v0, 9  ;;  %v995_v14 = vrot.slane %v2995_v8, 5  ;;  %v3018_v15 = vrot.slane %v3010_v1, 9 }
  0x57   : > { %v999_v32 = vrot.slane %v2997_v10, 5  ;;  %v1169_v21 = vrot.slane %v1167_v2, 4  ;;  %v1172_v22 = vrot.slane %v1170_v27, 5  ;;  %v1183_v23 = vrot.slane %v1181_v3, 4 }
  0x58   : > { %v1186_v24 = vrot.slane %v1184_v4, 5  ;;  %v858_v28 = vor.u32 %v857_v12, %v854_v11  ;;  %v872_v29 = vor.u32 %v871_v13, %v868_v62  ;;  %v875_v30 = vshll.u32 %v2997_v10, 16  ;;  %v3856_v13 = vld [vmem:[%s3604_s11 + $0x24] sm:$0x1] }
  0x59   : > { %v1176_v31 = vshll.u32 %v3812_v16, 16  ;;  %v891_v34 = vpack.c.b16 %v886_v7, %v885_v6  ;;  %v2977_v35 = vor.u32 %v3287_v19, %v2976_v9  ;;  %v996_v36 = vsel %vm3713_vm7, %v3017_v5, %v995_v14  ;;  %v3859_v5 = vld [vmem:[%s3604_s11 + $0x2c] sm:$0x1]  ;;  %v3074_v14 = vld [vmem:[%s3604_s11 + $0x10] sm:$0xe] }
  0x5a   : > { %2950 = vmatmul.msk.bf16.gmra.mxu2 %vm433_vm1, %v613_v25  ;;  %v861_v25 = vshll.u32 %v2995_v8, 16  ;;  %v1000_v37 = vsel %vm3713_vm7, %v3018_v15, %v999_v32  ;;  %v1173_v39 = vor.u32 %v1172_v22, %v1169_v21  ;;  %v1187_v41 = vor.u32 %v1186_v24, %v1183_v23  ;;  %v3075_v15 = vld [vmem:[%s3604_s11 + $0x18] sm:$0xe] }
  0x5b   : > { %v1190_v42 = vshll.u32 %v3817_v26, 16  ;;  %v859_v46 = vrot.slane %v858_v28, 4  ;;  %v873_v47 = vrot.slane %v872_v29, 4  ;;  %v877_v48 = vrot.slane %v875_v30, 5 }
  0x5c   : > { %v1178_v20 = vrot.slane %v1176_v31, 5  ;;  %v1009_v49 = vunpack.c.l.b16 %v996_v36  ;;  %v1010_v50 = vunpack.c.l.b16 %v1000_v37  ;;  %v1174_v18 = vrot.slane %v1173_v39, 4  ;;  %v3292_v37 = vld [vmem:[%s3875_s28 + $0x4] sm:$0xf0] }
  0x5d   : > { %3000 = vmatmul.msk.bf16.gmra.mxu0 %vm433_vm1, %v890_v17  ;;  %2980 = vmatmul.msk.bf16.gmra.mxu3 %vm433_vm1, %v2973_v45  ;;  %v863_v17 = vrot.slane %v861_v25, 5  ;;  %v1702_v45 = vsel %vm446_vm0, %v3115_v44, 0  ;;  %v1188_v53 = vrot.slane %v1187_v41, 4  ;;  %v1192_v55 = vrot.slane %v1190_v42, 5 }
  0x5e   : > { %1711 = vmatpush.bf16.msrb.mxu2 %v1702_v45  ;;  %v1824_v56 = vsel %vm446_vm0, %v3128_v33, 0  ;;  %v1907_v58 = vsel %vm446_vm0, %v3141_v52, 0  ;;  %v2101_v60 = vsel %vm446_vm0, %v3178_v57, 0  ;;  %v1212_v0 = vshll.u32 %v3059_v51, 16  ;;  %v3895_v57 = vld [vmem:[%s3604_s11 + $0x34] sm:$0x1] }
  0x5f   : > { %1833 = vmatpush.bf16.msrb.mxu3 %v1824_v56  ;;  %1916 = vmatpush.bf16.msrb.mxu0 %v1907_v58  ;;  %v864_v1 = vsel %vm3632_vm4, %v859_v46, %v863_v17  ;;  %v878_v2 = vsel %vm3632_vm4, %v873_v47, %v877_v48  ;;  %v1014_v27 = vpack.c.b16 %v1010_v50, %v1009_v49  ;;  %v1204_v19 = vshll.u32 %v3856_v13, 16  ;;  %v3898_v58 = vld [vmem:[%s3604_s11 + $0x3c] sm:$0x1] }
  0x60   : > { %2110 = vmatpush.bf16.msrb.mxu1 %v2101_v60  ;;  %v1179_v3 = vsel %vm3632_vm4, %v1174_v18, %v1178_v20  ;;  %v1193_v4 = vsel %vm3632_vm4, %v1188_v53, %v1192_v55  ;;  %v1214_v9 = vrot.slane %v1212_v0, 5  ;;  %v887_v10 = vunpack.c.l.b16 %v864_v1  ;;  %v3035_v20 = vld [vmem:[%s3604_s11 + $0x10] sm:$0xf] }
  0x61   : > { %v888_v11 = vunpack.c.l.b16 %v878_v2  ;;  %v1280_v12 = vunpack.c.l.b16 %v1179_v3  ;;  %v1281_v62 = vunpack.c.l.b16 %v1193_v4  ;;  %v1218_v22 = vshll.u32 %v3859_v5, 16 }
  0x62   : > { %v3082_v25 = vrot.slane %v3074_v14, 9  ;;  %v1370_v28 = vrot.slane %v3812_v16, 5  ;;  %v3083_v29 = vrot.slane %v3075_v15, 9  ;;  %v1374_v30 = vrot.slane %v3817_v26, 5  ;;  %v3063_v16 = vld [vmem:[%s3604_s11 + $0x38] sm:$0xf] }
  0x63   : > { %v892_v23 = vpack.c.b16 %v888_v11, %v887_v10  ;;  %v1288_v24 = vpack.c.b16 %v1281_v62, %v1280_v12  ;;  %v1220_v36 = vrot.slane %v1218_v22, 5  ;;  %v3097_v26 = vld [vmem:[%s3875_s28] sm:$0xf]  ;;  %v1237_v46 = vshrl.u32 %v3063_v16, 16  ;;  %v3101_v12 = vld [vmem:[%s3875_s28 + $0x10] sm:$0xf] }
  0x64   : > { %v1371_v39 = vsel %vm3713_vm7, %v3082_v25, %v1370_v28  ;;  %v1375_v41 = vsel %vm3713_vm7, %v3083_v29, %v1374_v30  ;;  %v1240_v47 = vshll.u32 %v3063_v16, 16  ;;  %v3098_v48 = vor.u32 %v3292_v37, %v3097_v26  ;;  %v3293_v62 = vld [vmem:[%s3875_s28 + $0x14] sm:$0xf0]  ;;  %v3065_v14 = vld [vmem:[%s3604_s11 + $0x40] sm:$0xf] }
  0x65   : > { %3022 = vmatmul.msk.bf16.gmra.mxu1 %vm433_vm1, %v1013_v63  ;;  %v1209_v63 = vshrl.u32 %v3059_v51, 16  ;;  %v1402_v49 = vunpack.c.l.b16 %v1371_v39  ;;  %v1403_v50 = vunpack.c.l.b16 %v1375_v41  ;;  %v1239_v53 = vrot.slane %v1237_v46, 4  ;;  %v3067_v15 = vld [vmem:[%s3604_s11 + $0x48] sm:$0xf]  ;;  %v3925_v39 = vld [vmem:[%s3604_s11 + $0x44] sm:$0x1] }
  0x66   : > { %v1242_v55 = vrot.slane %v1240_v47, 5  ;;  %v1232_v1 = vshll.u32 %v3895_v57, 16  ;;  %v1378_v4 = vrot.slane %v3856_v13, 5  ;;  %v3289_v13 = vld [vmem:[%s3604_s11 + $0x24] sm:$0xf0]  ;;  %v1254_v25 = vshll.u32 %v3065_v14, 16 }
  0x67   : > { %v1211_v8 = vrot.slane %v1209_v63, 4  ;;  %v1410_v60 = vpack.c.b16 %v1403_v50, %v1402_v49  ;;  %v3077_v63 = vld [vmem:[%s3604_s11 + $0x28] sm:$0xe]  ;;  %v1265_v28 = vshrl.u32 %v3067_v15, 16  ;;  %v1268_v29 = vshll.u32 %v3067_v15, 16 }
  0x68   : > { %v1243_v2 = vor.u32 %v1242_v55, %v1239_v53  ;;  %v1256_v16 = vrot.slane %v1254_v25, 5  ;;  %v3928_v41 = vld [vmem:[%s3604_s11 + $0x4c] sm:$0x1]  ;;  %v1260_v47 = vshll.u32 %v3925_v39, 16  ;;  %v1386_v49 = vrot.slane %v3895_v57, 5 }
  0x69   : > { %v1215_v21 = vor.u32 %v1214_v9, %v1211_v8  ;;  %v1234_v9 = vrot.slane %v1232_v1, 5  ;;  %v1267_v26 = vrot.slane %v1265_v28, 4  ;;  %v1270_v37 = vrot.slane %v1268_v29, 5  ;;  %v3105_v55 = vld [vmem:[%s3875_s28 + $0x20] sm:$0xf] }
  0x6a   : > { %2951 = vmatmul.msk.bf16.gmra.mxu2 %vm433_vm1, %v3767_v59  ;;  %v3057_v59 = vld [vmem:[%s3604_s11 + $0x20] sm:$0xf]  ;;  %v1244_v10 = vrot.slane %v1243_v2, 4  ;;  %v1550_v25 = vld [vmem:[%s3875_s28 + $0xc] sm:$0x1] }
  0x6b   : > { %v1195_v54 = vshrl.u32 %v3057_v59, 16  ;;  %v1198_v61 = vshll.u32 %v3057_v59, 16  ;;  %v3288_v59 = vld [vmem:[%s3604_s11 + $0x14] sm:$0xf0]  ;;  %v1547_v2 = vld [vmem:[%s3875_s28] sm:$0xf] }
  0x6c   : > { %v3036_v56 = vor.u32 %v3288_v59, %v3035_v20  ;;  %v1274_v20 = vshll.u32 %v3928_v41, 16  ;;  %v3164_v28 = vld [vmem:[%s3875_s28 + $0x10] sm:$0xf] }
  0x6d   : > { %3001 = vmatmul.msk.bf16.gmra.mxu0 %vm433_vm1, %v891_v34  ;;  %2981 = vmatmul.msk.bf16.gmra.mxu3 %vm433_vm1, %v2977_v35  ;;  %v1197_v6 = vrot.slane %v1195_v54, 4  ;;  %v1200_v7 = vrot.slane %v1198_v61, 5  ;;  %v1206_v34 = vrot.slane %v1204_v19, 5  ;;  %v1216_v35 = vrot.slane %v1215_v21, 4  ;;  %v3076_v61 = vld [vmem:[%s3604_s11 + $0x20] sm:$0xe] }
  0x6e   : > { %v3084_v3 = vrot.slane %v3076_v61, 9  ;;  %v3039_v19 = vld [vmem:[%s3604_s11 + $0x20] sm:$0xf]  ;;  %v3102_v21 = vor.u32 %v3293_v62, %v3101_v12  ;;  %v1276_v53 = vrot.slane %v1274_v20, 5  ;;  %v3290_v61 = vld [vmem:[%s3604_s11 + $0x34] sm:$0xf0] }
  0x6f   : > { %v1201_v32 = vor.u32 %v1200_v7, %v1197_v6  ;;  %v1221_v44 = vsel %vm3632_vm4, %v1216_v35, %v1220_v36  ;;  %v3085_v6 = vrot.slane %v3077_v63, 9  ;;  %v1382_v7 = vrot.slane %v3859_v5, 5 }
  0x70   : > { %v1283_v51 = vunpack.c.l.b16 %v1221_v44  ;;  %v3040_v30 = vor.u32 %v3289_v13, %v3039_v19  ;;  %v1564_v62 = vshrl.u32 %v1547_v2, 16  ;;  %v1980_v20 = vshll.u32 %v3164_v28, 16 }
  0x71   : > { %v1202_v31 = vrot.slane %v1201_v32, 4  ;;  %v1379_v32 = vsel %vm3713_vm7, %v3084_v3, %v1378_v4  ;;  %v1383_v5 = vsel %vm3713_vm7, %v3085_v6, %v1382_v7  ;;  %v1549_v3 = vld [vmem:[%s3875_s28 + $0x8] sm:$0xf] }
  0x72   : > { %v3162_v4 = vld [vmem:[%s3875_s28 + $0x8] sm:$0xf]  ;;  %v1578_v15 = vshrl.u32 %v1549_v3, 16 }
  0x73   : > { %v1207_v42 = vsel %vm3632_vm4, %v1202_v31, %v1206_v34  ;;  %v1404_v31 = vunpack.c.l.b16 %v1379_v32  ;;  %v1405_v34 = vunpack.c.l.b16 %v1383_v5  ;;  %v1581_v32 = vshll.u32 %v1549_v3, 16 }
  0x74   : > { %v1282_v33 = vunpack.c.l.b16 %v1207_v42  ;;  %v1963_v19 = vshrl.u32 %v3162_v4, 16  ;;  %v1966_v13 = vshll.u32 %v3162_v4, 16 }
  0x75   : > { %3023 = vmatmul.msk.bf16.gmra.mxu1 %vm433_vm1, %v1014_v27  ;;  %v1246_v27 = vshll.u32 %v3898_v58, 16  ;;  %v1411_v42 = vpack.c.b16 %v1405_v34, %v1404_v31  ;;  %v1741_v31 = vld [vmem:[%s3875_s28] sm:$0xe]  ;;  %v1742_v34 = vld [vmem:[%s3875_s28 + $0x8] sm:$0xe] }
  0x76   : > { %v1289_v54 = vpack.c.b16 %v1283_v51, %v1282_v33  ;;  %v1390_v33 = vrot.slane %v3898_v58, 5 }
  0x77   : > { %v1248_v11 = vrot.slane %v1246_v27, 5 }
  0x7a   : > { %2952 = vmatmul.msk.bf16.gmra.mxu2 %vm433_vm1, %v3789_v38  ;;  %v3061_v38 = vld [vmem:[%s3604_s11 + $0x30] sm:$0xf] }
  0x7b   : > { %v1223_v17 = vshrl.u32 %v3061_v38, 16  ;;  %v1226_v45 = vshll.u32 %v3061_v38, 16 }
  0x7d   : > { %3002 = vmatmul.msk.bf16.gmra.mxu0 %vm433_vm1, %v892_v23  ;;  %3070 = vmatmul.msk.bf16.vlgmr.msra.gmra.mxu3 %vm433_vm1, %v1288_v24  ;;  %v1225_v52 = vrot.slane %v1223_v17, 4  ;;  %v1228_v18 = vrot.slane %v1226_v45, 5  ;;  %v1249_v23 = vsel %vm3632_vm4, %v1244_v10, %v1248_v11  ;;  %v1251_v24 = vshrl.u32 %v3065_v14, 16  ;;  %v3078_v17 = vld [vmem:[%s3604_s11 + $0x30] sm:$0xe] }
  0x7e   : > { %v1285_v36 = vunpack.c.l.b16 %v1249_v23  ;;  %v3079_v45 = vld [vmem:[%s3604_s11 + $0x38] sm:$0xe]  ;;  %v3086_v59 = vrot.slane %v3078_v17, 9  ;;  %v3960_v10 = vld [vmem:[%s3604_s11 + $0x48] sm:$0xe]  ;;  %v1567_v14 = vshll.u32 %v1547_v2, 16 }
  0x7f   : > { %v1229_v0 = vor.u32 %v1228_v18, %v1225_v52  ;;  %v1253_v38 = vrot.slane %v1251_v24, 4  ;;  %v3087_v50 = vrot.slane %v3079_v45, 9  ;;  %v1262_v52 = vrot.slane %v1260_v47, 5  ;;  %v1548_v24 = vld [vmem:[%s3875_s28 + $0x4] sm:$0x1] }
  0x80   : > { %v1387_v57 = vsel %vm3713_vm7, %v3086_v59, %v1386_v49  ;;  %v3109_v45 = vld [vmem:[%s3875_s28 + $0x30] sm:$0xf]  ;;  %v3982_v47 = vld [vmem:[%s3875_s28 + $0xc] sm:$0x1]  ;;  %v1398_v59 = vrot.slane %v3928_v41, 5  ;;  %v1982_v2 = vrot.slane %v1980_v20, 5 }
  0x81   : > { %v1230_v8 = vrot.slane %v1229_v0, 4  ;;  %v1257_v46 = vor.u32 %v1256_v16, %v1253_v38  ;;  %v1391_v58 = vsel %vm3713_vm7, %v3087_v50, %v1390_v33  ;;  %v1406_v7 = vunpack.c.l.b16 %v1387_v57  ;;  %v3295_v49 = vld [vmem:[%s3875_s28 + $0x34] sm:$0xf0] }
  0x82   : > { %v1580_v16 = vrot.slane %v1578_v15, 4  ;;  %v3120_v50 = vrot.slane %v1741_v31, 9  ;;  %v1767_v33 = vrot.slane %v1548_v24, 5  ;;  %v3110_v4 = vor.u32 %v3295_v49, %v3109_v45  ;;  %v3249_v15 = vld [vmem:[%s4614_s3 + $0x1c] sm:$0xf] }
  0x83   : > { %v1235_v22 = vsel %vm3632_vm4, %v1230_v8, %v1234_v9  ;;  %v1258_v51 = vrot.slane %v1257_v46, 4  ;;  %v1407_v8 = vunpack.c.l.b16 %v1391_v58  ;;  %v3957_v9 = vld [vmem:[%s3604_s11 + $0x40] sm:$0xe]  ;;  %v1972_v58 = vshll.u32 %v3982_v47, 16 }
  0x84   : > { %v1284_v35 = vunpack.c.l.b16 %v1235_v22  ;;  %v3088_v5 = vrot.slane %v3957_v9, 9  ;;  %v3089_v22 = vrot.slane %v3960_v10, 9 }
  0x85   : > { %3111 = vmatmul.msk.bf16.vlgmr.msra.gmra.mxu1 %vm433_vm1, %v3098_v48  ;;  %v1271_v48 = vor.u32 %v1270_v37, %v1267_v26  ;;  %v1263_v0 = vsel %vm3632_vm4, %v1258_v51, %v1262_v52  ;;  %v1412_v29 = vpack.c.b16 %v1407_v8, %v1406_v7  ;;  %v1583_v26 = vrot.slane %v1581_v32, 5  ;;  %v3199_v37 = vld [vmem:[%s4614_s3 + $0x14] sm:$0xf] }
  0x86   : > { %v1290_v44 = vpack.c.b16 %v1285_v36, %v1284_v35  ;;  %v1286_v11 = vunpack.c.l.b16 %v1263_v0  ;;  %v1566_v35 = vrot.slane %v1564_v62, 4  ;;  %v1569_v36 = vrot.slane %v1567_v14, 5 }
  0x87   : > { %v1272_v18 = vrot.slane %v1271_v48, 4  ;;  %v2223_v46 = vsel %vm446_vm0, %v3199_v37, 0  ;;  %v1977_v48 = vshrl.u32 %v3164_v28, 16  ;;  %v1771_v51 = vrot.slane %v1550_v25, 5 }
  0x88   : > { %v1974_v62 = vrot.slane %v1972_v58, 5 }
  0x89   : > { %v1277_v1 = vsel %vm3632_vm4, %v1272_v18, %v1276_v53  ;;  %v3121_v18 = vrot.slane %v1742_v34, 9  ;;  %v1570_v53 = vor.u32 %v1569_v36, %v1566_v35  ;;  %v3166_v34 = vld [vmem:[%s3875_s28 + $0x18] sm:$0xf] }
  0x8a   : > { %3049 = vmatmul.msk.bf16.vlgmr.msra.gmra.mxu2 %vm433_vm1, %v3036_v56  ;;  %v3294_v56 = vld [vmem:[%s3875_s28 + $0x24] sm:$0xf0]  ;;  %v1287_v12 = vunpack.c.l.b16 %v1277_v1  ;;  %v1979_v1 = vrot.slane %v1977_v48, 4  ;;  %v3168_v48 = vld [vmem:[%s3875_s28 + $0x20] sm:$0xf]  ;;  %v1991_v20 = vshrl.u32 %v3166_v34, 16 }
  0x8b   : > { %v3106_v63 = vor.u32 %v3294_v56, %v3105_v55  ;;  %2232 = vmatpush.bf16.msra.mxu2 %v2223_v46  ;;  %v1573_v55 = vshll.u32 %v1548_v24, 16  ;;  %v1587_v56 = vshll.u32 %v1550_v25, 16  ;;  %v1772_v7 = vsel %vm3713_vm7, %v3121_v18, %v1771_v51  ;;  %v3270_v46 = vld [vmem:[%s4614_s3 + $0x20] sm:$0xf] }
  0x8c   : > { %v2500_v24 = vsel %vm446_vm0, %v3249_v15, 0  ;;  %v1800_v31 = vunpack.c.l.b16 %v1772_v7 }
  0x8d   : > { %3091 = vmatmul.msk.bf16.vlgmr.msra.gmra.mxu0 %vm433_vm1, %v1410_v60  ;;  %3071 = vmatmul.msk.bf16.gmra.mxu3 %vm433_vm1, %v1289_v54  ;;  %v3043_v54 = vld [vmem:[%s3604_s11 + $0x30] sm:$0xf]  ;;  %v1575_v8 = vrot.slane %v1573_v55, 5  ;;  %v1589_v9 = vrot.slane %v1587_v56, 5 }
  0x8e   : > { %v3044_v6 = vor.u32 %v3290_v61, %v3043_v54  ;;  %v3212_v54 = vld [vmem:[%s4614_s3 + $0x18] sm:$0xf]  ;;  %v1584_v61 = vor.u32 %v1583_v26, %v1580_v16  ;;  %2509 = vmatpush.bf16.msra.mxu0 %v2500_v24  ;;  %v1551_v16 = vld [vmem:[%s3875_s28 + $0x10] sm:$0xf]  ;;  %v4068_v24 = vld [vmem:[%s3875_s28 + $0x24] sm:$0x1] }
  0x8f   : > { %v2306_v57 = vsel %vm446_vm0, %v3212_v54, 0  ;;  %v1592_v51 = vshrl.u32 %v1551_v16, 16  ;;  %v4047_v54 = vld [vmem:[%s3875_s28 + $0x1c] sm:$0x1] }
  0x90   : > { %2315 = vmatpush.bf16.msra.mxu3 %v2306_v57 }
  0x95   : > { %3112 = vmatmul.msk.bf16.gmra.mxu1 %vm433_vm1, %v3102_v21  ;;  %v1394_v21 = vrot.slane %v3925_v39, 5  ;;  %v1965_v39 = vrot.slane %v1963_v19, 4 }
  0x97   : > { %v1395_v3 = vsel %vm3713_vm7, %v3088_v5, %v1394_v21  ;;  %v3291_v5 = vld [vmem:[%s3604_s11 + $0x44] sm:$0xf0] }
  0x98   : > { %v1408_v25 = vunpack.c.l.b16 %v1395_v3  ;;  %v2008_v3 = vshll.u32 %v3168_v48, 16 }
  0x9a   : > { %3050 = vmatmul.msk.bf16.gmra.mxu2 %vm433_vm1, %v3040_v30  ;;  %v1291_v30 = vpack.c.b16 %v1287_v12, %v1286_v11  ;;  %v1571_v11 = vrot.slane %v1570_v53, 4  ;;  %v1585_v12 = vrot.slane %v1584_v61, 4  ;;  %v1744_v61 = vld [vmem:[%s3875_s28 + $0x18] sm:$0xe] }
  0x9c   : > { %v1590_v26 = vsel %vm3632_vm4, %v1585_v12, %v1589_v9  ;;  %v3123_v9 = vrot.slane %v1744_v61, 9 }
  0x9d   : > { %3092 = vmatmul.msk.bf16.gmra.mxu0 %vm433_vm1, %v1411_v42  ;;  %3072 = vmatmul.msk.bf16.gmra.mxu3 %vm433_vm1, %v1290_v44  ;;  %v1968_v42 = vrot.slane %v1966_v13, 5  ;;  %v3047_v13 = vld [vmem:[%s3604_s11 + $0x40] sm:$0xf]  ;;  %v4044_v55 = vunpack.c.l.b16 %v1590_v26 }
  0x9e   : > { %v3048_v36 = vor.u32 %v3291_v5, %v3047_v13 }
  0x9f   : > { %v1969_v0 = vor.u32 %v1968_v42, %v1965_v39 }
  0xa0   : > { %v3941_v60 = vpop.f32.mrf.mxu3 }
  0xa1   : > { %v1970_v21 = vrot.slane %v1969_v0, 4 }
  0xa2   : > { %v523_v27 = vpop.f32.mrf.mxu1 }
  0xa3   : > { %v1975_v37 = vsel %vm3632_vm4, %v1970_v21, %v1974_v62  ;;  %v4060_v62 = vld [vmem:[%s3875_s28 + $0x1c] sm:$0x1]  ;;  %v2010_v21 = vrot.slane %v2008_v3, 5 }
  0xa4   : > { %v2076_v56 = vunpack.c.l.b16 %v1975_v37  ;;  %v1555_v37 = vld [vmem:[%s3875_s28 + $0x20] sm:$0xf] }
  0xa5   : > { %3113 = vmatmul.msk.bf16.gmra.mxu1 %vm433_vm1, %v3106_v63  ;;  %v3997_v63 = vld [vmem:[%s3875_s28 + $0x14] sm:$0x1] }
  0xa6   : > { %v1986_v14 = vshll.u32 %v3997_v63, 16 }
  0xa8   : > { %v3966_v23 = vpop.f32.mrf.mxu3  ;;  %v1988_v42 = vrot.slane %v1986_v14, 5 }
  0xaa   : > { %v459_v38 = vpop.f32.mrf.mxu0  ;;  %3051 = vmatmul.msk.bf16.gmra.mxu2 %vm433_vm1, %v3044_v6  ;;  %v525_v17 = vpop.f32.mrf.mxu1  ;;  %v1768_v6 = vsel %vm3713_vm7, %v3120_v50, %v1767_v33  ;;  %v1743_v50 = vld [vmem:[%s3875_s28 + $0x10] sm:$0xe]  ;;  %v2622_v33 = vsel %vm446_vm0, %v3270_v46, 0 }
  0xab   : > { %v3977_v44 = vadd.f32 %v523_v27, %v459_v38  ;;  %v1576_v38 = vsel %vm3632_vm4, %v1571_v11, %v1575_v8  ;;  %2631 = vmatpush.bf16.msra.mxu1 %v2622_v33  ;;  %v1594_v11 = vrot.slane %v1592_v51, 4 }
  0xac   : > { %v4042_v53 = vunpack.c.l.b16 %v1576_v38 }
  0xad   : > { %3093 = vmatmul.msk.bf16.gmra.mxu0 %vm433_vm1, %v1412_v29  ;;  %v469_v52 = vpop.f32.mrf.mxu2  ;;  %3073 = vmatmul.msk.bf16.gmra.mxu3 %vm433_vm1, %v1291_v30  ;;  %v1799_v30 = vunpack.c.l.b16 %v1768_v6  ;;  %v1993_v6 = vrot.slane %v1991_v20, 4  ;;  %v1557_v20 = vld [vmem:[%s3875_s28 + $0x28] sm:$0xf] }
  0xae   : > { %v3992_v41 = vadd.f32 %v3941_v60, %v469_v52  ;;  %v1399_v60 = vsel %vm3713_vm7, %v3089_v22, %v1398_v59  ;;  %v1983_v22 = vor.u32 %v1982_v2, %v1979_v1  ;;  %v1994_v59 = vshll.u32 %v3166_v34, 16  ;;  %v1553_v1 = vld [vmem:[%s3875_s28 + $0x18] sm:$0xf] }
  0xaf   : > { %v1409_v28 = vunpack.c.l.b16 %v1399_v60  ;;  %v1807_v49 = vpack.c.b16 %v1800_v31, %v1799_v30  ;;  %v1595_v52 = vshll.u32 %v1551_v16, 16  ;;  %v2005_v2 = vshrl.u32 %v3168_v48, 16 }
  0xb0   : > { %v3999_v27 = vpop.f32.mrf.mxu3  ;;  %v1984_v39 = vrot.slane %v1983_v22, 4  ;;  %v3122_v60 = vrot.slane %v1743_v50, 9  ;;  %v1996_v7 = vrot.slane %v1994_v59, 5  ;;  %v1609_v13 = vshll.u32 %v1553_v1, 16 }
  0xb1   : > { %v1597_v12 = vrot.slane %v1595_v52, 5  ;;  %v2007_v5 = vrot.slane %v2005_v2, 4  ;;  %v2014_v48 = vshll.u32 %v4068_v24, 16  ;;  %v3296_v52 = vld [vmem:[%s3875_s28 + $0xc] sm:$0xf0] }
  0xb2   : > { %v461_v10 = vpop.f32.mrf.mxu0  ;;  %v528_v19 = vpop.f32.mrf.mxu1  ;;  %v1989_v0 = vsel %vm3632_vm4, %v1984_v39, %v1988_v42  ;;  %v1611_v26 = vrot.slane %v1609_v13, 5 }
  0xb3   : > { %v4013_v32 = vadd.f32 %v525_v17, %v461_v10  ;;  %v4031_v17 = vld [vmem:[%s3875_s28 + $0x14] sm:$0x1]  ;;  %v1779_v10 = vrot.slane %v4047_v54, 5  ;;  %v2077_v15 = vunpack.c.l.b16 %v1989_v0  ;;  %v1598_v30 = vor.u32 %v1597_v12, %v1594_v11  ;;  %v3172_v11 = vld [vmem:[%s3875_s28 + $0x30] sm:$0xf] }
  0xb4   : > { %v1601_v31 = vshll.u32 %v4031_v17, 16  ;;  %v2011_v46 = vor.u32 %v2010_v21, %v2007_v5  ;;  %v1637_v0 = vshll.u32 %v1557_v20, 16  ;;  %v1746_v12 = vld [vmem:[%s3875_s28 + $0x28] sm:$0xe] }
  0xb5   : > { %v471_v29 = vpop.f32.mrf.mxu2  ;;  %3114 = vmatmul.msk.bf16.gmra.mxu1 %vm433_vm1, %v3110_v4  ;;  %v1775_v4 = vrot.slane %v4031_v17, 5  ;;  %v2084_v38 = vpack.c.b16 %v2077_v15, %v2076_v56  ;;  %v3144_v17 = vld [vmem:[%s3875_s28 + $0x8] sm:$0xf]  ;;  %v1623_v56 = vshll.u32 %v1555_v37, 16 }
  0xb6   : > { %v4020_v35 = vadd.f32 %v3966_v23, %v471_v29  ;;  %v1413_v23 = vpack.c.b16 %v1409_v28, %v1408_v25  ;;  %v1997_v25 = vor.u32 %v1996_v7, %v1993_v6  ;;  %v2000_v28 = vshll.u32 %v4060_v62, 16 }
  0xb7   : > { %v1776_v29 = vsel %vm3713_vm7, %v3122_v60, %v1775_v4  ;;  %v2012_v3 = vrot.slane %v2011_v46, 4  ;;  %v2016_v60 = vrot.slane %v2014_v48, 5  ;;  %v1556_v4 = vld [vmem:[%s3875_s28 + $0x24] sm:$0x1]  ;;  %v3145_v6 = vor.u32 %v3296_v52, %v3144_v17  ;;  %v4115_v52 = vld [vmem:[%s3875_s28 + $0x2c] sm:$0x1] }
  0xb8   : > { %v4033_v45 = vpop.f32.mrf.mxu3  ;;  %v1801_v59 = vunpack.c.l.b16 %v1776_v29  ;;  %v1998_v50 = vrot.slane %v1997_v25, 4  ;;  %v2002_v33 = vrot.slane %v2000_v28, 5 }
  0xba   : > { %v464_v18 = vpop.f32.mrf.mxu0  ;;  %3052 = vmatmul.msk.bf16.gmra.mxu2 %vm433_vm1, %v3048_v36  ;;  %v530_v58 = vpop.f32.mrf.mxu1  ;;  %v1685_v36 = vpack.c.b16 %v4044_v55, %v4042_v53  ;;  %v1603_v53 = vrot.slane %v1601_v31, 5  ;;  %v1620_v55 = vshrl.u32 %v1555_v37, 16  ;;  %v2017_v31 = vsel %vm3632_vm4, %v2012_v3, %v2016_v60 }
  0xbb   : > { %v4050_v57 = vadd.f32 %v528_v19, %v464_v18  ;;  %v1606_v19 = vshrl.u32 %v1553_v1, 16  ;;  %v1599_v18 = vrot.slane %v1598_v30, 4  ;;  %v3170_v1 = vld [vmem:[%s3875_s28 + $0x28] sm:$0xf]  ;;  %v1783_v37 = vrot.slane %v1556_v4, 5 }
  0xbc   : > { %v1622_v15 = vrot.slane %v1620_v55, 4  ;;  %v2019_v13 = vshrl.u32 %v3170_v1, 16  ;;  %v2022_v5 = vshll.u32 %v3170_v1, 16  ;;  %v4127_v1 = vld [vmem:[%s3875_s28 + $0x34] sm:$0x1] }
  0xbd   : > { %3094 = vmatmul.msk.bf16.gmra.mxu0 %vm433_vm1, %v1413_v23  ;;  %v474_v8 = vpop.f32.mrf.mxu2  ;;  %3129 = vmatmul.msk.bf16.vlgmr.msrb.gmra.mxu3 %vm433_vm1, %v1807_v49  ;;  %v1608_v16 = vrot.slane %v1606_v19, 4  ;;  %v1615_v23 = vshll.u32 %v4047_v54, 16  ;;  %v1625_v19 = vrot.slane %v1623_v56, 5  ;;  %v1604_v25 = vsel %vm3632_vm4, %v1599_v18, %v1603_v53 }
  0xbe   : > { %v4063_v14 = vadd.f32 %v3999_v27, %v474_v8  ;;  %v1780_v27 = vsel %vm3713_vm7, %v3123_v9, %v1779_v10  ;;  %v1558_v9 = vld [vmem:[%s3875_s28 + $0x2c] sm:$0x1]  ;;  %v1745_v10 = vld [vmem:[%s3875_s28 + $0x20] sm:$0xe]  ;;  %v2021_v17 = vrot.slane %v2019_v13, 4 }
  0xbf   : > { %v1802_v49 = vunpack.c.l.b16 %v1780_v27  ;;  %v1612_v61 = vor.u32 %v1611_v26, %v1608_v16  ;;  %v1617_v2 = vrot.slane %v1615_v23, 5  ;;  %v1639_v27 = vrot.slane %v1637_v0, 5 }
  0xc0   : > { %v4065_v22 = vpop.f32.mrf.mxu3  ;;  %v2036_v16 = vshll.u32 %v3172_v11, 16  ;;  %v3125_v23 = vrot.slane %v1746_v12, 9  ;;  %v1787_v46 = vrot.slane %v1558_v9, 5  ;;  %v1626_v48 = vor.u32 %v1625_v19, %v1622_v15 }
  0xc1   : > { %v1808_v8 = vpack.c.b16 %v1802_v49, %v1801_v59  ;;  %v1613_v28 = vrot.slane %v1612_v61, 4  ;;  %v2024_v59 = vrot.slane %v2022_v5, 5  ;;  %v2042_v12 = vshll.u32 %v4127_v1, 16  ;;  %v3148_v5 = vld [vmem:[%s3875_s28 + $0x18] sm:$0xf] }
  0xc2   : > { %v466_v34 = vpop.f32.mrf.mxu0  ;;  %v4081_v42 = vpop.f32.mrf.mxu1  ;;  %v2038_v55 = vrot.slane %v2036_v16, 5  ;;  %v1627_v3 = vrot.slane %v1626_v48, 4  ;;  %v1747_v16 = vld [vmem:[%s3875_s28 + $0x30] sm:$0xe] }
  0xc3   : > { %v4079_v39 = vadd.f32 %v530_v58, %v466_v34  ;;  %v1634_v58 = vshrl.u32 %v1557_v20, 16  ;;  %v3124_v34 = vrot.slane %v1745_v10, 9  ;;  %v1629_v20 = vshll.u32 %v1556_v4, 16 }
  0xc4   : > { %v1618_v18 = vsel %vm3632_vm4, %v1613_v28, %v1617_v2  ;;  %v2025_v2 = vor.u32 %v2024_v59, %v2021_v17  ;;  %v2028_v4 = vshll.u32 %v4115_v52, 16  ;;  %v4152_v59 = vld [vmem:[%s3875_s28 + $0x3c] sm:$0x1] }
  0xc5   : > { %v476_v51 = vpop.f32.mrf.mxu2  ;;  %3179 = vmatmul.msk.bf16.vlgmr.msrb.gmra.mxu1 %vm433_vm1, %v2084_v38  ;;  %v1636_v29 = vrot.slane %v1634_v58, 4  ;;  %v2033_v38 = vshrl.u32 %v3172_v11, 16  ;;  %v1679_v58 = vunpack.c.l.b16 %v1604_v25  ;;  %v1784_v0 = vsel %vm3713_vm7, %v3124_v34, %v1783_v37  ;;  %v3297_v25 = vld [vmem:[%s3875_s28 + $0x1c] sm:$0xf0] }
  0xc6   : > { %v4089_v54 = vadd.f32 %v4033_v45, %v476_v51  ;;  %v2003_v45 = vsel %vm3632_vm4, %v1998_v50, %v2002_v33  ;;  %v2079_v50 = vunpack.c.l.b16 %v2017_v31  ;;  %v1643_v51 = vshll.u32 %v1558_v9, 16 }
  0xc7   : > { %v2078_v26 = vunpack.c.l.b16 %v2003_v45  ;;  %v1640_v33 = vor.u32 %v1639_v27, %v1636_v29  ;;  %v2035_v53 = vrot.slane %v2033_v38, 4  ;;  %v1631_v60 = vrot.slane %v1629_v20, 5 }
  0xc8   : > { %v4094_v7 = vpop.f32.mrf.mxu3  ;;  %v1645_v9 = vrot.slane %v1643_v51, 5  ;;  %v1803_v15 = vunpack.c.l.b16 %v1784_v0  ;;  %v2026_v29 = vrot.slane %v2025_v2, 4  ;;  %v2030_v27 = vrot.slane %v2028_v4, 5  ;;  %v1748_v51 = vld [vmem:[%s3875_s28 + $0x38] sm:$0xe] }
  0xc9   : > { %v1641_v45 = vrot.slane %v1640_v33, 4  ;;  %v2039_v11 = vor.u32 %v2038_v55, %v2035_v53  ;;  %v1632_v28 = vsel %vm3632_vm4, %v1627_v3, %v1631_v60  ;;  %v2044_v37 = vrot.slane %v2042_v12, 5  ;;  %v1559_v53 = vld [vmem:[%s3875_s28 + $0x30] sm:$0xf]  ;;  %v1561_v0 = vld [vmem:[%s3875_s28 + $0x38] sm:$0xf] }
  0xca   : > { %v4102_v21 = vpop.f32.mrf.mxu0  ;;  %3116 = vmatmul.msk.bf16.vlgmr.msrb.gmra.mxu2 %vm433_vm1, %v1685_v36  ;;  %v4107_v30 = vpop.f32.mrf.mxu1  ;;  %v3149_v48 = vor.u32 %v3297_v25, %v3148_v5  ;;  %v4149_v17 = vunpack.c.l.b16 %v1632_v28  ;;  %v2031_v33 = vsel %vm3632_vm4, %v2026_v29, %v2030_v27  ;;  %v4180_v25 = vld [vmem:[%s3875_s28 + $0x3c] sm:$0x1]  ;;  %v2170_v27 = vrot.slane %v3997_v63, 5 }
  0xcb   : > { %v1646_v38 = vsel %vm3632_vm4, %v1641_v45, %v1645_v9  ;;  %v1648_v9 = vshrl.u32 %v1559_v53, 16  ;;  %v2080_v12 = vunpack.c.l.b16 %v2031_v33 }
  0xcd   : > { %3158 = vmatmul.msk.bf16.vlgmr.msrb.gmra.mxu0 %vm433_vm1, %v3145_v6  ;;  %v640_v36 = vpop.f32.mrf.mxu2  ;;  %3130 = vmatmul.msk.bf16.gmra.mxu3 %vm433_vm1, %v1808_v8  ;;  %v2085_v8 = vpack.c.b16 %v2079_v50, %v2078_v26  ;;  %v2040_v26 = vrot.slane %v2039_v11, 4  ;;  %v4155_v50 = vunpack.c.l.b16 %v1646_v38 }
  0xce   : > { %v660_v49 = vadd.f32 %v640_v36, %v3977_v44  ;;  %v1788_v44 = vsel %vm3713_vm7, %v3125_v23, %v1787_v46  ;;  %v4143_v23 = vld [vmem:[%s3875_s28 + $0x34] sm:$0x1]  ;;  %v3174_v46 = vld [vmem:[%s3875_s28 + $0x38] sm:$0xf] }
  0xcf   : > { %v1804_v19 = vunpack.c.l.b16 %v1788_v44  ;;  %v2047_v44 = vshrl.u32 %v3174_v46, 16  ;;  %v2050_v3 = vshll.u32 %v3174_v46, 16  ;;  %v2045_v4 = vsel %vm3632_vm4, %v2040_v26, %v2044_v37  ;;  %v4192_v46 = vld [vmem:[%s3875_s28 + $0x44] sm:$0x1] }
  0xd0   : > { %v743_v56 = vadd.f32 %v4065_v22, %v660_v49  ;;  %v4120_v61 = vpop.f32.mrf.mxu3  ;;  %v1680_v22 = vunpack.c.l.b16 %v1618_v18  ;;  %v3176_v49 = vld [vmem:[%s3875_s28 + $0x40] sm:$0xf]  ;;  %v3126_v18 = vrot.slane %v1747_v16, 9  ;;  %v2081_v5 = vunpack.c.l.b16 %v2045_v4 }
  0xd1   : > { %v2049_v28 = vrot.slane %v2047_v44, 4  ;;  %v2052_v29 = vrot.slane %v2050_v3, 5  ;;  %v1650_v37 = vrot.slane %v1648_v9, 4  ;;  %v3183_v44 = vld [vmem:[%s3875_s28 + $0x8] sm:$0xe]  ;;  %v1671_v4 = vshll.u32 %v4152_v59, 16 }
  0xd2   : > { %v919_v6 = vpop.f32.mrf.mxu0  ;;  %v4130_v10 = vpop.f32.mrf.mxu1  ;;  %v1686_v34 = vpack.c.b16 %v1680_v22, %v1679_v58  ;;  %v1791_v58 = vrot.slane %v4143_v23, 5  ;;  %v2061_v22 = vshrl.u32 %v3176_v49, 16  ;;  %v3184_v3 = vld [vmem:[%s3875_s28 + $0x10] sm:$0xe] }
  0xd3   : > { %v2053_v33 = vor.u32 %v2052_v29, %v2049_v28 }
  0xd4   : > { %v1792_v26 = vsel %vm3713_vm7, %v3126_v18, %v1791_v58 }
  0xd5   : > { %v642_v13 = vpop.f32.mrf.mxu2  ;;  %3180 = vmatmul.msk.bf16.gmra.mxu1 %vm433_vm1, %v2085_v8  ;;  %v2064_v8 = vshll.u32 %v3176_v49, 16  ;;  %v2086_v49 = vpack.c.b16 %v2081_v5, %v2080_v12  ;;  %v2054_v12 = vrot.slane %v2053_v33, 4 }
  0xd6   : > { %v661_v31 = vadd.f32 %v642_v13, %v4013_v32  ;;  %v1809_v32 = vpack.c.b16 %v1804_v19, %v1803_v15  ;;  %v1651_v15 = vshll.u32 %v1559_v53, 16  ;;  %v1662_v19 = vshrl.u32 %v1561_v0, 16 }
  0xd7   : > { %v1665_v13 = vshll.u32 %v1561_v0, 16  ;;  %v1805_v53 = vunpack.c.l.b16 %v1792_v26  ;;  %v2070_v0 = vshll.u32 %v4192_v46, 16 }
  0xd8   : > { %v744_v36 = vadd.f32 %v4094_v7, %v661_v31  ;;  %v4147_v20 = vpop.f32.mrf.mxu3  ;;  %v937_v7 = vadd.f32 %v4102_v21, %v743_v56  ;;  %v3127_v21 = vrot.slane %v1748_v51, 9  ;;  %v1795_v56 = vrot.slane %v4152_v59, 5 }
  0xd9   : > { %v2063_v31 = vrot.slane %v2061_v22, 4  ;;  %v1667_v63 = vrot.slane %v1665_v13, 5  ;;  %v3191_v22 = vrot.slane %v3183_v44, 9  ;;  %v2072_v13 = vrot.slane %v2070_v0, 5 }
  0xda   : > { %v922_v55 = vpop.f32.mrf.mxu0  ;;  %3117 = vmatmul.msk.bf16.gmra.mxu2 %vm433_vm1, %v1686_v34  ;;  %v938_v60 = vadd.f32 %v919_v6, %v744_v36  ;;  %v4165_v2 = vpop.f32.mrf.mxu1  ;;  %v4170_v45 = vadd.f32 %v4081_v42, %v937_v7  ;;  %v2066_v34 = vrot.slane %v2064_v8, 5  ;;  %v1664_v36 = vrot.slane %v1662_v19, 4  ;;  %v3152_v8 = vld [vmem:[%s3875_s28 + $0x28] sm:$0xf] }
  0xdb   : > { %v1657_v7 = vshll.u32 %v4143_v23, 16 }
  0xdc   : > { %v4174_v11 = vadd.f32 %v4107_v30, %v938_v60  ;;  %v2166_v30 = vrot.slane %v3982_v47, 5  ;;  %v1653_v47 = vrot.slane %v1651_v15, 5  ;;  %v2067_v58 = vor.u32 %v2066_v34, %v2063_v31 }
  0xdd   : > { %3159 = vmatmul.msk.bf16.gmra.mxu0 %vm433_vm1, %v3149_v48  ;;  %v645_v6 = vpop.f32.mrf.mxu2  ;;  %3131 = vmatmul.msk.bf16.gmra.mxu3 %vm433_vm1, %v1809_v32  ;;  %v2056_v48 = vshll.u32 %v4180_v25, 16 }
  0xde   : > { %v662_v42 = vadd.f32 %v645_v6, %v4050_v57  ;;  %v1796_v57 = vsel %vm3713_vm7, %v3127_v21, %v1795_v56  ;;  %v3298_v21 = vld [vmem:[%s3875_s28 + $0x2c] sm:$0xf0]  ;;  %v1654_v56 = vor.u32 %v1653_v47, %v1650_v37  ;;  %v2167_v15 = vsel %vm3713_vm7, %v3191_v22, %v2166_v30 }
  0xdf   : > { %v1806_v60 = vunpack.c.l.b16 %v1796_v57  ;;  %v2058_v9 = vrot.slane %v2056_v48, 5  ;;  %v2068_v19 = vrot.slane %v2067_v58, 4  ;;  %v3153_v29 = vor.u32 %v3298_v21, %v3152_v8 }
  0xe0   : > { %v745_v38 = vadd.f32 %v4120_v61, %v662_v42  ;;  %v4185_v16 = vpop.f32.mrf.mxu3  ;;  %v1687_v61 = vpack.c.b16 %v4155_v50, %v4149_v17  ;;  %v3192_v17 = vrot.slane %v3184_v3, 9  ;;  %v2198_v42 = vunpack.c.l.b16 %v2167_v15  ;;  %v3215_v15 = vld [vmem:[%s3875_s28 + $0x10] sm:$0xf] }
  0xe1   : > { %v1810_v31 = vpack.c.b16 %v1806_v60, %v1805_v53  ;;  %v1655_v34 = vrot.slane %v1654_v56, 4  ;;  %v2073_v47 = vsel %vm3632_vm4, %v2068_v19, %v2072_v13  ;;  %v3235_v53 = vld [vmem:[%s3875_s28 + $0x18] sm:$0xf]  ;;  %v3254_v56 = vld [vmem:[%s3875_s28 + $0x10] sm:$0xe] }
  0xe2   : > { %v924_v32 = vpop.f32.mrf.mxu0  ;;  %v939_v51 = vadd.f32 %v922_v55, %v745_v38  ;;  %v4197_v18 = vpop.f32.mrf.mxu1  ;;  %v1668_v55 = vor.u32 %v1667_v63, %v1664_v36  ;;  %v2171_v59 = vsel %vm3713_vm7, %v3192_v17, %v2170_v27  ;;  %v1673_v27 = vrot.slane %v1671_v4, 5 }
  0xe3   : > { %v2199_v5 = vunpack.c.l.b16 %v2171_v59  ;;  %v2376_v4 = vshrl.u32 %v3235_v53, 16  ;;  %v2379_v22 = vshll.u32 %v3235_v53, 16  ;;  %v3300_v59 = vld [vmem:[%s3875_s28 + $0x14] sm:$0xf0] }
  0xe4   : > { %v4207_v6 = vadd.f32 %v4130_v10, %v939_v51  ;;  %v1669_v30 = vrot.slane %v1668_v55, 4  ;;  %v2083_v51 = vunpack.c.l.b16 %v2073_v47  ;;  %v3255_v55 = vld [vmem:[%s3875_s28 + $0x18] sm:$0xe]  ;;  %v3216_v47 = vor.u32 %v3300_v59, %v3215_v15 }
  0xe5   : > { %v647_v50 = vpop.f32.mrf.mxu2  ;;  %3181 = vmatmul.msk.bf16.gmra.mxu1 %vm433_vm1, %v2086_v49  ;;  %v4216_v38 = vpack.c.b16 %v2199_v5, %v2198_v42  ;;  %v3234_v42 = vld [vmem:[%s3875_s28 + $0x14] sm:$0x1]  ;;  %v3236_v5 = vld [vmem:[%s3875_s28 + $0x1c] sm:$0x1] }
  0xe6   : > { %v663_v23 = vadd.f32 %v647_v50, %v4079_v39  ;;  %v1659_v39 = vrot.slane %v1657_v7, 5  ;;  %v1674_v49 = vsel %vm3632_vm4, %v1669_v30, %v1673_v27  ;;  %v2178_v30 = vrot.slane %v4068_v24, 5 }
  0xe7   : > { %v1684_v3 = vunpack.c.l.b16 %v1674_v49 }
  0xe8   : > { %v746_v28 = vadd.f32 %v4147_v20, %v663_v23  ;;  %v735_v10 = vpop.f32.mrf.mxu3  ;;  %v2059_v20 = vsel %vm3632_vm4, %v2054_v12, %v2058_v9  ;;  %v1660_v48 = vsel %vm3632_vm4, %v1655_v34, %v1659_v39  ;;  %v3299_v12 = vld [vmem:[%s3875_s28 + $0x3c] sm:$0xf0]  ;;  %v2565_v34 = vrot.slane %v3234_v42, 5 }
  0xe9   : > { %v2082_v33 = vunpack.c.l.b16 %v2059_v20  ;;  %v1683_v44 = vunpack.c.l.b16 %v1660_v48  ;;  %v3263_v39 = vrot.slane %v3255_v55, 9  ;;  %v2385_v48 = vshll.u32 %v3236_v5, 16  ;;  %v3239_v55 = vld [vmem:[%s3875_s28 + $0x28] sm:$0xf] }
  0xea   : > { %v927_v26 = vpop.f32.mrf.mxu0  ;;  %3118 = vmatmul.msk.bf16.gmra.mxu2 %vm433_vm1, %v1687_v61  ;;  %v940_v57 = vadd.f32 %v924_v32, %v746_v28  ;;  %v4219_v37 = vpop.f32.mrf.mxu1  ;;  %v3233_v32 = vld [vmem:[%s3875_s28 + $0x10] sm:$0xf]  ;;  %v2378_v28 = vrot.slane %v2376_v4, 4 }
  0xeb   : > { %v2362_v58 = vshrl.u32 %v3233_v32, 16  ;;  %v2365_v0 = vshll.u32 %v3233_v32, 16  ;;  %v2087_v60 = vpack.c.b16 %v2083_v51, %v2082_v33  ;;  %v1688_v13 = vpack.c.b16 %v1684_v3, %v1683_v44  ;;  %v3185_v32 = vld [vmem:[%s3875_s28 + $0x18] sm:$0xe] }
  0xec   : > { %v4226_v36 = vadd.f32 %v4165_v2, %v940_v57  ;;  %v3193_v51 = vrot.slane %v3185_v32, 9  ;;  %v2387_v4 = vrot.slane %v2385_v48, 5 }
  0xed   : > { %3160 = vmatmul.msk.bf16.gmra.mxu0 %vm433_vm1, %v3153_v29  ;;  %v650_v63 = vpop.f32.mrf.mxu2  ;;  %3132 = vmatmul.msk.bf16.gmra.mxu3 %vm433_vm1, %v1810_v31  ;;  %v2364_v8 = vrot.slane %v2362_v58, 4  ;;  %v2367_v21 = vrot.slane %v2365_v0, 5  ;;  %v2381_v29 = vrot.slane %v2379_v22, 5  ;;  %v3262_v31 = vrot.slane %v3254_v56, 9 }
  0xee   : > { %v664_v61 = vadd.f32 %v650_v63, %v3992_v41  ;;  %v2371_v63 = vshll.u32 %v3234_v42, 16  ;;  %v2404_v42 = vshrl.u32 %v3239_v55, 16 }
  0xef   : > { %v2382_v33 = vor.u32 %v2381_v29, %v2378_v28  ;;  %v2566_v24 = vsel %vm3713_vm7, %v3262_v31, %v2565_v34 }
  0xf0   : > { %v747_v2 = vadd.f32 %v4185_v16, %v664_v61  ;;  %v4238_v7 = vpop.f32.mrf.mxu3  ;;  %v3156_v16 = vld [vmem:[%s3875_s28 + $0x38] sm:$0xf]  ;;  %v3186_v61 = vld [vmem:[%s3875_s28 + $0x20] sm:$0xe]  ;;  %v2406_v48 = vrot.slane %v2404_v42, 4 }
  0xf1   : > { %v3157_v20 = vor.u32 %v3299_v12, %v3156_v16  ;;  %v3194_v53 = vrot.slane %v3186_v61, 9  ;;  %v3237_v16 = vld [vmem:[%s3875_s28 + $0x20] sm:$0xf] }
  0xf2   : > { %v929_v41 = vpop.f32.mrf.mxu0  ;;  %v941_v17 = vadd.f32 %v927_v26, %v747_v2  ;;  %v4240_v50 = vpop.f32.mrf.mxu1  ;;  %v2174_v26 = vrot.slane %v4060_v62, 5  ;;  %v2390_v59 = vshrl.u32 %v3237_v16, 16 }
  0xf3   : > { %v2179_v44 = vsel %vm3713_vm7, %v3194_v53, %v2178_v30 }
  0xf4   : > { %v4246_v9 = vadd.f32 %v4197_v18, %v941_v17  ;;  %v2569_v18 = vrot.slane %v3236_v5, 5  ;;  %v2175_v0 = vsel %vm3713_vm7, %v3193_v51, %v2174_v26  ;;  %v2201_v17 = vunpack.c.l.b16 %v2179_v44  ;;  %v3257_v26 = vld [vmem:[%s3875_s28 + $0x28] sm:$0xe] }
  0xf5   : > { %v652_v23 = vpop.f32.mrf.mxu2  ;;  %3182 = vmatmul.msk.bf16.gmra.mxu1 %vm433_vm1, %v2087_v60  ;;  %v2373_v60 = vrot.slane %v2371_v63, 5  ;;  %v2200_v22 = vunpack.c.l.b16 %v2175_v0  ;;  %v2407_v5 = vshll.u32 %v3239_v55, 16  ;;  %v3240_v63 = vld [vmem:[%s3875_s28 + $0x2c] sm:$0x1] }
  0xf6   : > { %v665_v19 = vadd.f32 %v652_v23, %v4020_v35  ;;  %v2368_v35 = vor.u32 %v2367_v21, %v2364_v8  ;;  %v2383_v8 = vrot.slane %v2382_v33, 4  ;;  %v2597_v21 = vunpack.c.l.b16 %v2566_v24  ;;  %v3301_v33 = vld [vmem:[%s3875_s28 + $0x24] sm:$0xf0] }
  0xf7   : > { %v4277_v23 = vpack.c.b16 %v2201_v17, %v2200_v22  ;;  %v2409_v32 = vrot.slane %v2407_v5, 5  ;;  %v3265_v24 = vrot.slane %v3257_v26, 9  ;;  %v2413_v44 = vshll.u32 %v3240_v63, 16  ;;  %v3241_v17 = vld [vmem:[%s3875_s28 + $0x30] sm:$0xf] }
  0xf8   : > { %v748_v27 = vadd.f32 %v735_v10, %v665_v19  ;;  %v4257_v57 = vpop.f32.mrf.mxu3  ;;  %v2570_v10 = vsel %vm3713_vm7, %v3263_v39, %v2569_v18  ;;  %v2369_v58 = vrot.slane %v2368_v35, 4  ;;  %v2393_v19 = vshll.u32 %v3237_v16, 16  ;;  %v3256_v39 = vld [vmem:[%s3875_s28 + $0x20] sm:$0xe] }
  0xf9   : > { %v2598_v56 = vunpack.c.l.b16 %v2570_v10  ;;  %v2388_v29 = vsel %vm3632_vm4, %v2383_v8, %v2387_v4  ;;  %v3264_v51 = vrot.slane %v3256_v39, 9  ;;  %v2421_v42 = vshll.u32 %v3241_v17, 16 }
  0xfa   : > { %v932_v49 = vpop.f32.mrf.mxu0  ;;  %3119 = vmatmul.msk.bf16.gmra.mxu2 %vm433_vm1, %v1688_v13  ;;  %v4262_v62 = vpop.f32.mrf.mxu1  ;;  %v942_v2 = vadd.f32 %v929_v41, %v748_v27  ;;  %v2374_v28 = vsel %vm3632_vm4, %v2369_v58, %v2373_v60  ;;  %v2395_v18 = vrot.slane %v2393_v19, 5  ;;  %v2418_v19 = vshrl.u32 %v3241_v17, 16 }
  0xfb   : > { %v2605_v31 = vpack.c.b16 %v2598_v56, %v2597_v21  ;;  %v2475_v35 = vunpack.c.l.b16 %v2374_v28  ;;  %v2415_v56 = vrot.slane %v2413_v44, 5  ;;  %v2423_v26 = vrot.slane %v2421_v42, 5 }
  0xfc   : > { %v4281_v13 = vadd.f32 %v4219_v37, %v942_v2  ;;  %v2392_v37 = vrot.slane %v2390_v59, 4 }
  0xfd   : > { %3161 = vmatmul.msk.bf16.gmra.mxu0 %vm433_vm1, %v3157_v20  ;;  %v655_v3 = vpop.f32.mrf.mxu2  ;;  %3229 = vmatmul.msk.bf16.vlgmr.msra.gmra.mxu3 %vm433_vm1, %v3216_v47  ;;  %v2476_v20 = vunpack.c.l.b16 %v2388_v29  ;;  %v3238_v47 = vld [vmem:[%s3875_s28 + $0x24] sm:$0x1] }
  0xfe   : > { %v666_v41 = vadd.f32 %v655_v3, %v4063_v14  ;;  %v2573_v53 = vrot.slane %v3238_v47, 5  ;;  %v2396_v58 = vor.u32 %v2395_v18, %v2392_v37  ;;  %v2399_v0 = vshll.u32 %v3238_v47, 16 }
  0xff   : > { %v2483_v3 = vpack.c.b16 %v2476_v20, %v2475_v35  ;;  %v2420_v18 = vrot.slane %v2418_v19, 4 }
 0x100   : > { %v749_v12 = vadd.f32 %v4238_v7, %v666_v41  ;;  %v1316_v15 = vpop.f32.mrf.mxu3  ;;  %v2574_v22 = vsel %vm3713_vm7, %v3264_v51, %v2573_v53  ;;  %v3243_v41 = vld [vmem:[%s3875_s28 + $0x38] sm:$0xf]  ;;  %v2397_v8 = vrot.slane %v2396_v58, 4  ;;  %v2401_v21 = vrot.slane %v2399_v0, 5  ;;  %v3258_v53 = vld [vmem:[%s3875_s28 + $0x30] sm:$0xe] }
 0x101   : > { %v2599_v59 = vunpack.c.l.b16 %v2574_v22  ;;  %v2432_v29 = vshrl.u32 %v3243_v41, 16  ;;  %v2424_v58 = vor.u32 %v2423_v26, %v2420_v18  ;;  %v3266_v22 = vrot.slane %v3258_v53, 9 }
 0x102   : > { %v934_v14 = vpop.f32.mrf.mxu0  ;;  %v943_v7 = vadd.f32 %v932_v49, %v749_v12  ;;  %v4287_v34 = vpop.f32.mrf.mxu1  ;;  %v3219_v49 = vld [vmem:[%s3875_s28 + $0x20] sm:$0xf]  ;;  %v2402_v39 = vsel %vm3632_vm4, %v2397_v8, %v2401_v21 }
 0x103   : > { %v3220_v60 = vor.u32 %v3301_v33, %v3219_v49  ;;  %v2434_v20 = vrot.slane %v2432_v29, 4  ;;  %v3244_v49 = vld [vmem:[%s3875_s28 + $0x3c] sm:$0x1]  ;;  %v2477_v33 = vunpack.c.l.b16 %v2402_v39 }
 0x104   : > { %v4292_v30 = vadd.f32 %v4240_v50, %v943_v7  ;;  %v2577_v50 = vrot.slane %v3240_v63, 5 }
 0x105   : > { %v657_v27 = vpop.f32.mrf.mxu2  ;;  %3271 = vmatmul.msk.bf16.vlgmr.msra.gmra.mxu1 %vm433_vm1, %v2605_v31  ;;  %v2435_v31 = vshll.u32 %v3243_v41, 16  ;;  %v2585_v41 = vrot.slane %v3244_v49, 5 }
 0x106   : > { %v667_v61 = vadd.f32 %v657_v27, %v4089_v54  ;;  %v2410_v54 = vor.u32 %v2409_v32, %v2406_v48  ;;  %v3223_v32 = vld [vmem:[%s3875_s28 + $0x30] sm:$0xf] }
 0x107   : > { %v2437_v47 = vrot.slane %v2435_v31, 5 }
 0x108   : > { %v750_v10 = vadd.f32 %v4257_v57, %v667_v61  ;;  %v4301_v2 = vpop.f32.mrf.mxu3  ;;  %v2578_v57 = vsel %vm3713_vm7, %v3265_v24, %v2577_v50  ;;  %v3302_v61 = vld [vmem:[%s3875_s28 + $0x34] sm:$0xf0] }
 0x109   : > { %v2600_v28 = vunpack.c.l.b16 %v2578_v57  ;;  %v3259_v24 = vld [vmem:[%s3875_s28 + $0x38] sm:$0xe] }
 0x10a   : > { %v1438_v4 = vpop.f32.mrf.mxu0  ;;  %3200 = vmatmul.msk.bf16.vlgmr.msra.gmra.mxu2 %vm433_vm1, %v4216_v38  ;;  %v4308_v16 = vpop.f32.mrf.mxu1  ;;  %v944_v55 = vadd.f32 %v934_v14, %v750_v10  ;;  %v2411_v38 = vrot.slane %v2410_v54, 4  ;;  %v3187_v10 = vld [vmem:[%s3875_s28 + $0x28] sm:$0xe]  ;;  %v2438_v54 = vor.u32 %v2437_v47, %v2434_v20  ;;  %v3267_v57 = vrot.slane %v3259_v24, 9  ;;  %v3227_v24 = vld [vmem:[%s3875_s28 + $0x40] sm:$0xf] }
 0x10b   : > { %v2606_v35 = vpack.c.b16 %v2600_v28, %v2599_v59 }
 0x10c   : > { %v2416_v37 = vsel %vm3632_vm4, %v2411_v38, %v2415_v56  ;;  %v3195_v56 = vrot.slane %v3187_v10, 9  ;;  %v2425_v38 = vrot.slane %v2424_v58, 4  ;;  %v2439_v42 = vrot.slane %v2438_v54, 4 }
 0x10d   : > { %3250 = vmatmul.msk.bf16.vlgmr.msra.gmra.mxu0 %vm433_vm1, %v2483_v3  ;;  %v1122_v12 = vpop.f32.mrf.mxu2  ;;  %3230 = vmatmul.msk.bf16.gmra.mxu3 %vm433_vm1, %v3220_v60  ;;  %v2478_v51 = vunpack.c.l.b16 %v2416_v37  ;;  %v3224_v3 = vor.u32 %v3302_v61, %v3223_v32  ;;  %v3188_v60 = vld [vmem:[%s3875_s28 + $0x30] sm:$0xe] }
 0x10e   : > { %v1142_v5 = vadd.f32 %v1122_v12, %v4170_v45  ;;  %v4323_v45 = vadd.f32 %v4262_v62, %v944_v55  ;;  %v2182_v55 = vrot.slane %v4115_v52, 5  ;;  %v3196_v12 = vrot.slane %v3188_v60, 9 }
 0x10f   : > { %v2586_v52 = vsel %vm3713_vm7, %v3267_v57, %v2585_v41 }
 0x110   : > { %v1336_v7 = vadd.f32 %v1316_v15, %v1142_v5  ;;  %v4316_v14 = vpop.f32.mrf.mxu3  ;;  %v3242_v15 = vld [vmem:[%s3875_s28 + $0x34] sm:$0x1]  ;;  %v2602_v26 = vunpack.c.l.b16 %v2586_v52  ;;  %v2190_v52 = vrot.slane %v4180_v25, 5 }
 0x111   : > { %v2427_v0 = vshll.u32 %v3242_v15, 16  ;;  %v2581_v17 = vrot.slane %v3242_v15, 5 }
 0x112   : > { %v1440_v27 = vpop.f32.mrf.mxu0  ;;  %v1458_v63 = vadd.f32 %v1438_v4, %v1336_v7  ;;  %v4326_v48 = vpop.f32.mrf.mxu1  ;;  %v2441_v4 = vshll.u32 %v3244_v49, 16 }
 0x113   : > { %v2429_v59 = vrot.slane %v2427_v0, 5  ;;  %v2582_v28 = vsel %vm3713_vm7, %v3266_v22, %v2581_v17  ;;  %v3189_v22 = vld [vmem:[%s3875_s28 + $0x38] sm:$0xe]  ;;  %v3190_v17 = vld [vmem:[%s3875_s28 + $0x40] sm:$0xe] }
 0x114   : > { %v4334_v62 = vadd.f32 %v4287_v34, %v1458_v63  ;;  %v2484_v34 = vpack.c.b16 %v2478_v51, %v2477_v33  ;;  %v2443_v5 = vrot.slane %v2441_v4, 5  ;;  %v2601_v18 = vunpack.c.l.b16 %v2582_v28 }
 0x115   : > { %v1124_v50 = vpop.f32.mrf.mxu2  ;;  %3272 = vmatmul.msk.bf16.gmra.mxu1 %vm433_vm1, %v2606_v35  ;;  %v2430_v7 = vsel %vm3632_vm4, %v2425_v38, %v2429_v59  ;;  %v3247_v35 = vld [vmem:[%s3875_s28 + $0x48] sm:$0xf]  ;;  %v3197_v28 = vrot.slane %v3189_v22, 9 }
 0x116   : > { %v1143_v44 = vadd.f32 %v1124_v50, %v4174_v11  ;;  %v2186_v11 = vrot.slane %v4127_v1, 5  ;;  %v2444_v37 = vsel %vm3632_vm4, %v2439_v42, %v2443_v5  ;;  %v2479_v32 = vunpack.c.l.b16 %v2430_v7  ;;  %v3303_v50 = vld [vmem:[%s3875_s28 + $0x44] sm:$0xf0] }
 0x117   : > { %v2480_v61 = vunpack.c.l.b16 %v2444_v37  ;;  %v2607_v53 = vpack.c.b16 %v2602_v26, %v2601_v18  ;;  %v2463_v10 = vshll.u32 %v3247_v35, 16  ;;  %v2191_v25 = vsel %vm3713_vm7, %v3197_v28, %v2190_v52 }
 0x118   : > { %v1337_v8 = vadd.f32 %v4301_v2, %v1143_v44  ;;  %v4341_v21 = vpop.f32.mrf.mxu3  ;;  %v2187_v31 = vsel %vm3713_vm7, %v3196_v12, %v2186_v11  ;;  %v3260_v44 = vld [vmem:[%s3875_s28 + $0x40] sm:$0xe] }
 0x119   : > { %v2203_v63 = vunpack.c.l.b16 %v2187_v31  ;;  %v2465_v11 = vrot.slane %v2463_v10, 5  ;;  %v3268_v38 = vrot.slane %v3260_v44, 9 }
 0x11a   : > { %v1443_v19 = vpop.f32.mrf.mxu0  ;;  %3201 = vmatmul.msk.bf16.gmra.mxu2 %vm433_vm1, %v4277_v23  ;;  %v4347_v2 = vpop.f32.mrf.mxu1  ;;  %v1459_v29 = vadd.f32 %v1440_v27, %v1337_v8  ;;  %v2183_v23 = vsel %vm3713_vm7, %v3195_v56, %v2182_v55  ;;  %v3245_v27 = vld [vmem:[%s3875_s28 + $0x40] sm:$0xf]  ;;  %v3246_v56 = vld [vmem:[%s3875_s28 + $0x44] sm:$0x1]  ;;  %v3248_v55 = vld [vmem:[%s3875_s28 + $0x4c] sm:$0x1] }
 0x11b   : > { %v2202_v47 = vunpack.c.l.b16 %v2183_v23  ;;  %v2449_v49 = vshll.u32 %v3245_v27, 16  ;;  %v2589_v59 = vrot.slane %v3246_v56, 5  ;;  %v2455_v23 = vshll.u32 %v3246_v56, 16 }
 0x11c   : > { %v4370_v33 = vadd.f32 %v4308_v16, %v1459_v29  ;;  %v3228_v16 = vor.u32 %v3303_v50, %v3227_v24  ;;  %v3198_v29 = vrot.slane %v3190_v17, 9  ;;  %v2469_v31 = vshll.u32 %v3248_v55, 16 }
 0x11d   : > { %3251 = vmatmul.msk.bf16.gmra.mxu0 %vm433_vm1, %v2484_v34  ;;  %v1127_v1 = vpop.f32.mrf.mxu2  ;;  %3231 = vmatmul.msk.bf16.gmra.mxu3 %vm433_vm1, %v3224_v3  ;;  %v3261_v3 = vld [vmem:[%s3875_s28 + $0x48] sm:$0xe]  ;;  %v2208_v4 = vpack.c.b16 %v2203_v63, %v2202_v47  ;;  %v2451_v41 = vrot.slane %v2449_v49, 5  ;;  %v2485_v34 = vpack.c.b16 %v2480_v61, %v2479_v32  ;;  %v2590_v26 = vsel %vm3713_vm7, %v3268_v38, %v2589_v59 }
 0x11e   : > { %v1144_v39 = vadd.f32 %v1127_v1, %v4207_v6  ;;  %v2446_v6 = vshrl.u32 %v3245_v27, 16  ;;  %v2457_v47 = vrot.slane %v2455_v23, 5  ;;  %v2471_v63 = vrot.slane %v2469_v31, 5 }
 0x120   : > { %v1338_v15 = vadd.f32 %v4316_v14, %v1144_v39  ;;  %v4367_v20 = vpop.f32.mrf.mxu3  ;;  %v2460_v14 = vshrl.u32 %v3247_v35, 16  ;;  %v2448_v57 = vrot.slane %v2446_v6, 4  ;;  %v2603_v6 = vunpack.c.l.b16 %v2590_v26 }
 0x122   : > { %v1445_v51 = vpop.f32.mrf.mxu0  ;;  %v1460_v58 = vadd.f32 %v1443_v19, %v1338_v15  ;;  %v1529_v0 = vpop.f32.mrf.mxu1  ;;  %v2462_v12 = vrot.slane %v2460_v14, 4  ;;  %v2593_v19 = vrot.slane %v3248_v55, 5  ;;  %v2452_v1 = vor.u32 %v2451_v41, %v2448_v57 }
 0x124   : > { %v4377_v60 = vadd.f32 %v4326_v48, %v1460_v58  ;;  %v3269_v48 = vrot.slane %v3261_v3, 9  ;;  %v2466_v39 = vor.u32 %v2465_v11, %v2462_v12  ;;  %v2453_v15 = vrot.slane %v2452_v1, 4 }
 0x125   : > { %v1129_v54 = vpop.f32.mrf.mxu2  ;;  %3273 = vmatmul.msk.bf16.gmra.mxu1 %vm433_vm1, %v2607_v53  ;;  %v2204_v53 = vunpack.c.l.b16 %v2191_v25 }
 0x126   : > { %v1145_v8 = vadd.f32 %v1129_v54, %v4226_v36  ;;  %v2194_v36 = vrot.slane %v4192_v46, 5  ;;  %v2467_v61 = vrot.slane %v2466_v39, 4  ;;  %v2458_v14 = vsel %vm3632_vm4, %v2453_v15, %v2457_v47 }
 0x127   : > { %v2481_v54 = vunpack.c.l.b16 %v2458_v14 }
 0x128   : > { %v1339_v42 = vadd.f32 %v4341_v21, %v1145_v8  ;;  %v1328_v5 = vpop.f32.mrf.mxu3  ;;  %v2594_v21 = vsel %vm3713_vm7, %v3269_v48, %v2593_v19  ;;  %v2195_v35 = vsel %vm3713_vm7, %v3198_v29, %v2194_v36  ;;  %v2472_v40 = vsel %vm3632_vm4, %v2467_v61, %v2471_v63 }
 0x129   : > { %v2604_v49 = vunpack.c.l.b16 %v2594_v21  ;;  %v2205_v24 = vunpack.c.l.b16 %v2195_v35 }
 0x12a   : > { %v1448_v7 = vpop.f32.mrf.mxu0  ;;  %3202 = vmatmul.msk.bf16.gmra.mxu2 %vm433_vm1, %v2208_v4  ;;  %v1461_v37 = vadd.f32 %v1445_v51, %v1339_v42  ;;  %v1531_v18 = vpop.f32.mrf.mxu1  ;;  %v2482_v4 = vunpack.c.l.b16 %v2472_v40 }
 0x12b   : > { %v2608_v10 = vpack.c.b16 %v2604_v49, %v2603_v6 }
 0x12c   : > { %v4396_v46 = vadd.f32 %v4347_v2, %v1461_v37  ;;  %v2486_v57 = vpack.c.b16 %v2482_v4, %v2481_v54 }
 0x12d   : > { %3252 = vmatmul.msk.bf16.gmra.mxu0 %vm433_vm1, %v2485_v34  ;;  %v1132_v27 = vpop.f32.mrf.mxu2  ;;  %3232 = vmatmul.msk.bf16.gmra.mxu3 %vm433_vm1, %v3228_v16  ;;  %v2209_v16 = vpack.c.b16 %v2205_v24, %v2204_v53 }
 0x12e   : > { %v1146_v32 = vadd.f32 %v1132_v27, %v4246_v9 }
 0x130   : > { %v1340_v51 = vadd.f32 %v4367_v20, %v1146_v32  ;;  %v1331_v2 = vpop.f32.mrf.mxu3 }
 0x132   : > { %v1450_v50 = vpop.f32.mrf.mxu0  ;;  %v1462_v58 = vadd.f32 %v1448_v7, %v1340_v51  ;;  %v1534_v44 = vpop.f32.mrf.mxu1 }
 0x134   : > { %v4408_v3 = vadd.f32 %v1529_v0, %v1462_v58 }
 0x135   : > { %v1134_v9 = vpop.f32.mrf.mxu2  ;;  %3274 = vmatmul.msk.bf16.gmra.mxu1 %vm433_vm1, %v2608_v10 }
 0x136   : > { %v1147_v20 = vadd.f32 %v1134_v9, %v4281_v13 }
 0x138   : > { %v1341_v22 = vadd.f32 %v1328_v5, %v1147_v20  ;;  %v1333_v17 = vpop.f32.mrf.mxu3 }
 0x13a   : > { %v1453_v41 = vpop.f32.mrf.mxu0  ;;  %3203 = vmatmul.msk.bf16.gmra.mxu2 %vm433_vm1, %v2209_v16  ;;  %v1463_v43 = vadd.f32 %v1450_v50, %v1341_v22  ;;  %v1536_v8 = vpop.f32.mrf.mxu1 }
 0x13c   : > { %v4413_v34 = vadd.f32 %v1531_v18, %v1463_v43 }
 0x13d   : > { %3253 = vmatmul.msk.bf16.gmra.mxu0 %vm433_vm1, %v2486_v57  ;;  %v1137_v0 = vpop.f32.mrf.mxu2 }
 0x13e   : > { %v1148_v56 = vadd.f32 %v1137_v0, %v4292_v30 }
 0x140   : > { %v1342_v55 = vadd.f32 %v1331_v2, %v1148_v56  ;;  %v1835_v13 = vpop.f32.mrf.mxu3 }
 0x142   : > { %v1455_v12 = vpop.f32.mrf.mxu0  ;;  %v1464_v11 = vadd.f32 %v1453_v41, %v1342_v55  ;;  %v2112_v38 = vpop.f32.mrf.mxu1 }
 0x144   : > { %v4417_v59 = vadd.f32 %v1534_v44, %v1464_v11 }
 0x145   : > { %v1139_v48 = vpop.f32.mrf.mxu2 }
 0x146   : > { %v1149_v19 = vadd.f32 %v1139_v48, %v4323_v45 }
 0x148   : > { %v1343_v42 = vadd.f32 %v1333_v17, %v1149_v19  ;;  %v1837_v5 = vpop.f32.mrf.mxu3 }
 0x14a   : > { %v1918_v28 = vpop.f32.mrf.mxu0  ;;  %v1465_v52 = vadd.f32 %v1455_v12, %v1343_v42  ;;  %v2114_v29 = vpop.f32.mrf.mxu1 }
 0x14c   : > { %v4420_v36 = vadd.f32 %v1536_v8, %v1465_v52 }
 0x14d   : > { %v1713_v1 = vpop.f32.mrf.mxu2 }
 0x14e   : > { %v1733_v50 = vadd.f32 %v1713_v1, %v4334_v62 }
 0x150   : > { %v1840_v23 = vpop.f32.mrf.mxu3  ;;  %v1855_v10 = vadd.f32 %v1835_v13, %v1733_v50 }
 0x152   : > { %v1920_v30 = vpop.f32.mrf.mxu0  ;;  %v4422_v31 = vpop.f32.mrf.mxu1  ;;  %v1938_v54 = vadd.f32 %v1918_v28, %v1855_v10 }
 0x154   : > { %v2132_v22 = vadd.f32 %v2112_v38, %v1938_v54 }
 0x155   : > { %v1715_v7 = vpop.f32.mrf.mxu2 }
 0x156   : > { %v1734_v9 = vadd.f32 %v1715_v7, %v4370_v33 }
 0x158   : > { %v1842_v39 = vpop.f32.mrf.mxu3  ;;  %v1856_v16 = vadd.f32 %v1837_v5, %v1734_v9 }
 0x15a   : > { %v1923_v37 = vpop.f32.mrf.mxu0  ;;  %v4424_v18 = vpop.f32.mrf.mxu1  ;;  %v1939_v8 = vadd.f32 %v1920_v30, %v1856_v16 }
 0x15c   : > { %v2133_v13 = vadd.f32 %v2114_v29, %v1939_v8 }
 0x15d   : > { %v1718_v26 = vpop.f32.mrf.mxu2 }
 0x15e   : > { %v1735_v62 = vadd.f32 %v1718_v26, %v4377_v60 }
 0x160   : > { %v4426_v21 = vpop.f32.mrf.mxu3  ;;  %v1857_v55 = vadd.f32 %v1840_v23, %v1735_v62 }
 0x162   : > { %v4428_v45 = vpop.f32.mrf.mxu0  ;;  %v4430_v25 = vpop.f32.mrf.mxu1  ;;  %v1940_v5 = vadd.f32 %v1923_v37, %v1857_v55 }
 0x164   : > { %v2134_v30 = vadd.f32 %v4422_v31, %v1940_v5 }
 0x165   : > { %v1720_v27 = vpop.f32.mrf.mxu2 }
 0x166   : > { %v1736_v19 = vadd.f32 %v1720_v27, %v4396_v46 }
 0x168   : > { %v4432_v35 = vpop.f32.mrf.mxu3  ;;  %v1858_v1 = vadd.f32 %v1842_v39, %v1736_v19 }
 0x16a   : > { %v4434_v15 = vpop.f32.mrf.mxu0  ;;  %v4436_v47 = vpop.f32.mrf.mxu1 }
 0x16d   : > { %v1723_v63 = vpop.f32.mrf.mxu2 }
 0x16e   : > { %v1737_v9 = vadd.f32 %v1723_v63, %v4408_v3 }
 0x170   : > { %v4438_v32 = vpop.f32.mrf.mxu3 }
 0x172   : > { %v4440_v61 = vpop.f32.mrf.mxu0  ;;  %v4442_v6 = vpop.f32.mrf.mxu1 }
 0x175   : > { %v4444_v49 = vpop.f32.mrf.mxu2 }
 0x178   : > { %v4446_v51 = vpop.f32.mrf.mxu3 }
 0x17a   : > { %v4448_v2 = vpop.f32.mrf.mxu0  ;;  %v4450_v53 = vpop.f32.mrf.mxu1 }
 0x17d   : > { %v4452_v24 = vpop.f32.mrf.mxu2 }
 0x180   : > { %v2317_v14 = vpop.f32.mrf.mxu3 }
 0x182   : > { %v4455_v40 = vpop.f32.mrf.mxu0  ;;  %v2633_v44 = vpop.f32.mrf.mxu1 }
 0x185   : > { %v4457_v58 = vpop.f32.mrf.mxu2 }
 0x188   : > { %v2319_v20 = vpop.f32.mrf.mxu3 }
 0x18a   : > { %v2511_v4 = vpop.f32.mrf.mxu0  ;;  %v2635_v41 = vpop.f32.mrf.mxu1 }
 0x18d   : > { %v2234_v17 = vpop.f32.mrf.mxu2 }
 0x18e   : > { %v2254_v57 = vadd.f32 %v2234_v17, %v2132_v22  ;;  %v1859_v17 = vadd.f32 %v4426_v21, %v1737_v9 }
 0x190   : > { %v2337_v43 = vadd.f32 %v2317_v14, %v2254_v57  ;;  %v2322_v11 = vpop.f32.mrf.mxu3 }
 0x192   : > { %v2531_v0 = vadd.f32 %v2511_v4, %v2337_v43  ;;  %v2513_v56 = vpop.f32.mrf.mxu0  ;;  %v2638_v60 = vpop.f32.mrf.mxu1 }
 0x194   : > { %v2653_v33 = vadd.f32 %v2633_v44, %v2531_v0  ;;  %v1941_v44 = vadd.f32 %v4428_v45, %v1858_v1  ;;  %v1738_v0 = vadd.f32 %v4444_v49, %v4413_v34 }
 0x195   : > { %v2236_v12 = vpop.f32.mrf.mxu2 }
 0x196   : > { %v2661_v38 = vpack.c.bf16 %v2653_v33, %v2653_v33  ;;  %v2255_v48 = vadd.f32 %v2236_v12, %v2133_v13  ;;  %v2701_v23 = vmul.f32 %v2653_v33, %v2653_v33  ;;  %v2678_v7 = vsel %vm433_vm1, %v2653_v33, 0.0 }
 0x197   : > { %v1942_v33 = vadd.f32 %v4434_v15, %v1859_v17 }
 0x198   : > { %v2338_v42 = vadd.f32 %v2319_v20, %v2255_v48  ;;  %2670 = vst.msk [vmem:[%s4466_s17] sm:$0xf] %vm2669_vm8, %v2661_v38  ;;  %v2324_v10 = vpop.f32.mrf.mxu3  ;;  %v2709_v39 = vsel %vm433_vm1, %v2701_v23, 0.0 }
 0x199   : > { %v2136_v48 = vadd.f32 %v4430_v25, %v1942_v33 }
 0x19a   : > { %v2532_v28 = vadd.f32 %v2513_v56, %v2338_v42  ;;  %v2516_v52 = vpop.f32.mrf.mxu0  ;;  %v2640_v22 = vpop.f32.mrf.mxu1 }
 0x19c   : > { %v2654_v29 = vadd.f32 %v2635_v41, %v2532_v28  ;;  %v2135_v41 = vadd.f32 %v4424_v18, %v1941_v44  ;;  %v1739_v28 = vadd.f32 %v4452_v24, %v4417_v59 }
 0x19d   : > { %v2239_v26 = vpop.f32.mrf.mxu2 }
 0x19e   : > { %v2662_v46 = vpack.c.bf16 %v2654_v29, %v2654_v29  ;;  %v2679_v37 = vsel %vm433_vm1, %v2654_v29, 0.0  ;;  %v2702_v27 = vmul.f32 %v2654_v29, %v2654_v29  ;;  %v2256_v50 = vadd.f32 %v2239_v26, %v2134_v30 }
 0x19f   : > { %v2680_v14 = vadd.f32 %v2679_v37, %v2678_v7  ;;  %v1861_v30 = vadd.f32 %v4438_v32, %v1739_v28 }
 0x1a0   : > { %v2710_v54 = vsel %vm433_vm1, %v2702_v27, 0.0  ;;  %v2339_v4 = vadd.f32 %v2322_v11, %v2256_v50  ;;  %2671 = vst.msk [vmem:[%s4466_s17 + $0x4] sm:$0xf] %vm2669_vm8, %v2662_v46  ;;  %v2327_v13 = vpop.f32.mrf.mxu3  ;;  %v1860_v11 = vadd.f32 %v4432_v35, %v1738_v0 }
 0x1a1   : > { %v2711_v31 = vadd.f32 %v2710_v54, %v2709_v39  ;;  %v1944_v32 = vadd.f32 %v4448_v2, %v1861_v30 }
 0x1a2   : > { %v2533_v20 = vadd.f32 %v2516_v52, %v2339_v4  ;;  %v2518_v16 = vpop.f32.mrf.mxu0  ;;  %v2643_v19 = vpop.f32.mrf.mxu1  ;;  %v1943_v23 = vadd.f32 %v4440_v61, %v1860_v11 }
 0x1a4   : > { %v2655_v57 = vadd.f32 %v2638_v60, %v2533_v20  ;;  %v2137_v26 = vadd.f32 %v4436_v47, %v1943_v23 }
 0x1a5   : > { %v2241_v45 = vpop.f32.mrf.mxu2 }
 0x1a6   : > { %v2663_v62 = vpack.c.bf16 %v2655_v57, %v2655_v57  ;;  %v2681_v3 = vsel %vm433_vm1, %v2655_v57, 0.0  ;;  %v2703_v63 = vmul.f32 %v2655_v57, %v2655_v57  ;;  %v2257_v43 = vadd.f32 %v2241_v45, %v2135_v41 }
 0x1a7   : > { %v2682_v8 = vadd.f32 %v2681_v3, %v2680_v14 }
 0x1a8   : > { %v2712_v56 = vsel %vm433_vm1, %v2703_v63, 0.0  ;;  %v2340_v55 = vadd.f32 %v2324_v10, %v2257_v43  ;;  %2672 = vst.msk [vmem:[%s4466_s17 + $0x8] sm:$0xf] %vm2669_vm8, %v2663_v62  ;;  %v2329_v29 = vpop.f32.mrf.mxu3  ;;  %v1740_v10 = vadd.f32 %v4457_v58, %v4420_v36 }
 0x1a9   : > { %v2713_v21 = vadd.f32 %v2712_v56, %v2711_v31  ;;  %v2138_v31 = vadd.f32 %v4442_v6, %v1944_v32 }
 0x1aa   : > { %v2534_v18 = vadd.f32 %v2518_v16, %v2340_v55  ;;  %v2521_v12 = vpop.f32.mrf.mxu0  ;;  %v2645_v61 = vpop.f32.mrf.mxu1  ;;  %v1862_v54 = vadd.f32 %v4446_v51, %v1740_v10 }
 0x1ac   : > { %v2656_v38 = vadd.f32 %v2640_v22, %v2534_v18  ;;  %v1945_v62 = vadd.f32 %v4455_v40, %v1862_v54 }
 0x1ad   : > { %v2244_v42 = vpop.f32.mrf.mxu2 }
 0x1ae   : > { %v2664_v34 = vpack.c.bf16 %v2656_v38, %v2656_v38  ;;  %v2683_v49 = vsel %vm433_vm1, %v2656_v38, 0.0  ;;  %v2704_v5 = vmul.f32 %v2656_v38, %v2656_v38  ;;  %v2258_v60 = vadd.f32 %v2244_v42, %v2136_v48 }
 0x1af   : > { %v2684_v15 = vadd.f32 %v2683_v49, %v2682_v8  ;;  %v2139_v43 = vadd.f32 %v4450_v53, %v1945_v62 }
 0x1b0   : > { %v2714_v52 = vsel %vm433_vm1, %v2704_v5, 0.0  ;;  %v2341_v1 = vadd.f32 %v2327_v13, %v2258_v60  ;;  %2673 = vst.msk [vmem:[%s4466_s17 + $0xc] sm:$0xf] %vm2669_vm8, %v2664_v34  ;;  %v2332_v20 = vpop.f32.mrf.mxu3 }
 0x1b1   : > { %v2715_v35 = vadd.f32 %v2714_v52, %v2713_v21 }
 0x1b2   : > { %v2535_v25 = vadd.f32 %v2521_v12, %v2341_v1  ;;  %v2523_v46 = vpop.f32.mrf.mxu0  ;;  %v2648_v6 = vpop.f32.mrf.mxu1 }
 0x1b4   : > { %v2657_v7 = vadd.f32 %v2643_v19, %v2535_v25 }
 0x1b5   : > { %v2246_v37 = vpop.f32.mrf.mxu2 }
 0x1b6   : > { %v2665_v27 = vpack.c.bf16 %v2657_v7, %v2657_v7  ;;  %v2685_v59 = vsel %vm433_vm1, %v2657_v7, 0.0  ;;  %v2705_v24 = vmul.f32 %v2657_v7, %v2657_v7  ;;  %v2259_v50 = vadd.f32 %v2246_v37, %v2137_v26 }
 0x1b7   : > { %v2686_v14 = vadd.f32 %v2685_v59, %v2684_v15 }
 0x1b8   : > { %v2716_v44 = vsel %vm433_vm1, %v2705_v24, 0.0  ;;  %v2342_v9 = vadd.f32 %v2329_v29, %v2259_v50  ;;  %2674 = vst.msk [vmem:[%s4466_s17 + $0x10] sm:$0xf] %vm2669_vm8, %v2665_v27  ;;  %v2334_v13 = vpop.f32.mrf.mxu3 }
 0x1b9   : > { %v2717_v47 = vadd.f32 %v2716_v44, %v2715_v35 }
 0x1ba   : > { %v2536_v39 = vadd.f32 %v2523_v46, %v2342_v9  ;;  %v2526_v2 = vpop.f32.mrf.mxu0  ;;  %v2650_v38 = vpop.f32.mrf.mxu1 }
 0x1bc   : > { %v2658_v4 = vadd.f32 %v2645_v61, %v2536_v39 }
 0x1bd   : > { %v2249_v16 = vpop.f32.mrf.mxu2 }
 0x1be   : > { %v2666_v22 = vpack.c.bf16 %v2658_v4, %v2658_v4  ;;  %v2687_v36 = vsel %vm433_vm1, %v2658_v4, 0.0  ;;  %v2706_v58 = vmul.f32 %v2658_v4, %v2658_v4  ;;  %v2260_v17 = vadd.f32 %v2249_v16, %v2138_v31 }
 0x1bf   : > { %v2688_v57 = vadd.f32 %v2687_v36, %v2686_v14 }
 0x1c0   : > { %v2718_v41 = vsel %vm433_vm1, %v2706_v58, 0.0  ;;  %v2343_v45 = vadd.f32 %v2332_v20, %v2260_v17  ;;  %2675 = vst.msk [vmem:[%s4466_s17 + $0x14] sm:$0xf] %vm2669_vm8, %v2666_v22 }
 0x1c1   : > { %v2719_v51 = vadd.f32 %v2718_v41, %v2717_v47 }
 0x1c2   : > { %v2537_v3 = vadd.f32 %v2526_v2, %v2343_v45  ;;  %v2528_v12 = vpop.f32.mrf.mxu0 }
 0x1c4   : > { %v2659_v63 = vadd.f32 %v2648_v6, %v2537_v3 }
 0x1c5   : > { %v2251_v8 = vpop.f32.mrf.mxu2 }
 0x1c6   : > { %v2667_v0 = vpack.c.bf16 %v2659_v63, %v2659_v63  ;;  %v2689_v56 = vsel %vm433_vm1, %v2659_v63, 0.0  ;;  %v2707_v55 = vmul.f32 %v2659_v63, %v2659_v63  ;;  %v2261_v33 = vadd.f32 %v2251_v8, %v2139_v43 }
 0x1c7   : > { %v2690_v21 = vadd.f32 %v2689_v56, %v2688_v57 }
 0x1c8   : > { %v2720_v40 = vsel %vm433_vm1, %v2707_v55, 0.0  ;;  %v2344_v18 = vadd.f32 %v2334_v13, %v2261_v33  ;;  %2676 = vst.msk [vmem:[%s4466_s17 + $0x18] sm:$0xf] %vm2669_vm8, %v2667_v0 }
 0x1c9   : > { %v2721_v53 = vadd.f32 %v2720_v40, %v2719_v51 }
 0x1ca   : > { %v2538_v11 = vadd.f32 %v2528_v12, %v2344_v18 }
 0x1cc   : > { %v2660_v48 = vadd.f32 %v2650_v38, %v2538_v11 }
 0x1ce   : > { %v2668_v19 = vpack.c.bf16 %v2660_v48, %v2660_v48  ;;  %v2691_v42 = vsel %vm433_vm1, %v2660_v48, 0.0  ;;  %v2708_v34 = vmul.f32 %v2660_v48, %v2660_v48 }
 0x1cf   : > { %v2692_v49 = vadd.f32 %v2691_v42, %v2690_v21 }
 0x1d0   : > { %v2722_v5 = vsel %vm433_vm1, %v2708_v34, 0.0  ;;  %2677 = vst.msk [vmem:[%s4466_s17 + $0x1c] sm:$0xf] %vm2669_vm8, %v2668_v19 }
 0x1d1   : > { %v2723_v60 = vadd.f32 %v2722_v5, %v2721_v53  ;;  %v2693_v15 = vrot.slane %v2692_v49, 4 }
 0x1d2   : > { %3386 = shalt.err (!%p3383_p3)
}
 0x1d3   : > { %s3483_s17 = smov 64   ;;  %s3484_s28 = smov 4   ;;  %v2724_v28 = vrot.slane %v2723_v60, 4  ;;  %v2694_v52 = vadd.f32 %v2693_v15, %v2692_v49  ;;  %vm2699_vm9 = vcmask 57344  }
 0x1d4   : > { %3308 = dma.vmem_to_hbm [thread:$0]  (%p3560_p5), %s4523_s20, 512, %s2755_s29, %s2732_s9, %s3483_s17, %s3483_s17, %s3484_s28  }
 0x1d5   : > { %v2695_v1 = vrot.slane %v2694_v52, 2  ;;  %s2766_s12 = scalar_lea.hbm %s4616_s5, %s3541_s25  ;;  %v2725_v23 = vadd.f32 %v2724_v28, %v2723_v60  ;;  %s2736_s11 = sand.u32 1, %s3541_s25  }
 0x1d6   : > { %s2779_s18 = scalar_lea.hbm %s4617_s6, %s3541_s25  ;;  %s269_s19 = scalar_lea.vmem [#allocation4], %s4461_s15 }
 0x1d7   : > { %v2696_v35 = vadd.f32 %v2695_v1, %v2694_v52  ;;  %v2726_v25 = vrot.slane %v2725_v23, 2  ;;  %s4551_s26 = sshll.u32 %s269_s19, 4  ;;  %s4553_s20 = sshll.u32 %s2766_s12, 4  ;;  %s2769_s26 = int_to_ptr.vmem [resolvable:$true] %s4551_s26  ;;  %s2771_s20 = int_to_ptr.hbm [resolvable:$true] %s4553_s20 }
 0x1d8   : > { %s275_s29 = scalar_lea.vmem [#allocation6], %s4461_s15  ;;  %s4558_s17 = sshll.u32 %s2779_s18, 4  ;;  %s2784_s17 = int_to_ptr.hbm [resolvable:$true] %s4558_s17 }
 0x1d9   : > { %v2697_v29 = vrot.slane %v2696_v35, 1  ;;  %v2727_v30 = vadd.f32 %v2726_v25, %v2725_v23  ;;  %s4556_s9 = sshll.u32 %s275_s29, 4  ;;  %s2737_s25 = scalar_lea.sflag [#allocation5], %s2736_s11  ;;  %s2782_s9 = int_to_ptr.vmem [resolvable:$true] %s4556_s9 }
 0x1da   : > { %s3401_s28 = sshra.s32 %s2771_s20, 4  ;;  %s3407_s12 = scalar_lea.hbm %s4616_s5, 2  ;;  %s3402_s28 = int_to_ptr.hbm [resolvable:$true] %s3401_s28 }
 0x1db   : > { %v2698_v7 = vadd.f32 %v2697_v29, %v2696_v35  ;;  %v2728_v26 = vrot.slane %v2727_v30, 1  ;;  %s3403_s15 = scalar_lea.hbm %s3402_s28, 1  ;;  %p3408_p9 = scmp.lt.s32.totalorder %s3402_s28, %s4616_s5 }
 0x1dc   : > { %p3404_p4 = scmp.ne.s32.totalorder %s3402_s28, %s3403_s15  ;;  %p3409_p10 = scmp.lt.s32.totalorder %s3407_s12, %s3403_s15 }
 0x1dd   : > { %2700 = vst.msk [vmem:[%s269_s19] sm:$0x1] %vm2699_vm9, %v2698_v7  ;;  %v2729_v46 = vadd.f32 %v2728_v26, %v2727_v30 }
 0x1de   : > { %p3405_p7 = pnand %p3404_p4, %p3560_p5  ;;  %p3410_p11 = por %p3409_p10, %p3408_p9 }
 0x1e0   : > { %p3406_p8 = pneg %p3405_p7 }
 0x1e2   : > { %p3411_p12 = pnand %p3410_p11, %p3406_p8 }
 0x1e4   : > { %3414 = shalt.err (!%p3411_p12)
}
 0x1e5   : > { %3309 = dma.vmem_to_hbm [thread:$0]  (%p3560_p5), %s2769_s26, 16, %s2771_s20, %s2737_s25   ;;  %2730 = vst.msk [vmem:[%s275_s29] sm:$0x1] %vm2699_vm9, %v2729_v46 }
 0x1e6   : > { %s3429_s11 = sshra.s32 %s2784_s17, 4  ;;  %s3435_s15 = scalar_lea.hbm %s4617_s6, 2  ;;  %s3430_s11 = int_to_ptr.hbm [resolvable:$true] %s3429_s11 }
 0x1e7   : > { %s3431_s18 = scalar_lea.hbm %s3430_s11, 1  ;;  %p3436_p2 = scmp.lt.s32.totalorder %s3430_s11, %s4617_s6 }
 0x1e8   : > { %p3432_p13 = scmp.ne.s32.totalorder %s3430_s11, %s3431_s18  ;;  %p3437_p3 = scmp.lt.s32.totalorder %s3435_s15, %s3431_s18 }
 0x1ea   : > { %p3433_p0 = pnand %p3432_p13, %p3560_p5  ;;  %p3438_p4 = por %p3437_p3, %p3436_p2 }
 0x1ec   : > { %p3434_p1 = pneg %p3433_p0 }
 0x1ee   : > { %p3439_p7 = pnand %p3438_p4, %p3434_p1 }
 0x1f0   : > { %3442 = shalt.err (!%p3439_p7)
}
 0x1f1   : > { %3310 = dma.vmem_to_hbm [thread:$0]  (%p3560_p5), %s2782_s9, 16, %s2784_s17, %s2737_s25  }
 0x1f2 PF: > { %p3324_p8 = scmp.ge.s32.totalorder %s3481_s24, 2  ;;  %s2795_s26 = sand.u32 1, %s3469_s21  }
 0x1f3   : > { %s2796_s20 = scalar_lea.sflag [#allocation3], %s2795_s26 }
 0x1f4   : > { %p3315_p9 = pnand %p3324_p8, %p3564_p6 }
 0x1f6   : > { %p3316_p10 = pneg %p3315_p9 }
 0x1f8   : > { %3460 = dma.done.wait (%p3316_p10), %s2796_s20, 512  }
 0x1f9   : > { %3462 = vsyncadd (%p3316_p10), %s2796_s20, 4294966784  ;;  %s4625_s29 = sadd.s32 4294967294, %s3481_s24  }
 0x1fa   : > { %s2805_s7 = sand.u32 1, %s4625_s29  }
 0x1fb   : > { %s2806_s12 = scalar_lea.sflag [#allocation5], %s2805_s7 }
 0x1fc   : > { %3464 = dma.done.wait (%p3316_p10), %s2806_s12, 32  }
 0x1fd   : > { %3466 = vsyncadd (%p3316_p10), %s2806_s12, 4294967264  ;;  %p20_p5 = scmp.ge.s32.totalorder %s3545_s27, 4   ;;  %s4626_s21 = smov %s3473_s22 }
 0x1fe   : > { %s4627_s22 = smov %s3477_s23  ;;  %s4628_s23 = smov %s3558_s30 }
 0x1ff   : > { %s4629_s24 = smov %s3545_s27  ;;  %22 = sbr.rel (!%p20_p5) target bundleno = 5 (0x5), region = 126 }
 0x204   :  { %2820 = vsyncpa [#allocation3], 1 }
 0x205   :  { %2822 = vsyncpa [#allocation3 + $0x1], 1 }
 0x206   :  { %2823 = vsyncpa [#allocation5], 1 }
 0x207   :  { %2825 = vsyncpa [#allocation5 + $0x1], 1 }

</bundles_post_ra>
